<compile_context>
chip_gen: v7x
topology: tpu7x:2x2x1
jax: 0.10.0
libtpu: 0.0.40
codegen_flags: <defaults>
</compile_context>

<pallas_src>
import functools

import jax
import jax.numpy as jnp
from jax.experimental import pallas as pl
from jax.experimental.pallas import tpu as pltpu

EPS = 1e-5       # BatchNorm2d default eps
LANES = 128
HALO = 64        # lane headroom per side of a working slab; must be >= the
                 # largest stencil offset (W + 3)  ->  supports W up to 61.


def _round_up(x, m):
    return (x + m - 1) // m * m


# ------------------------------ Pallas kernel ------------------------------ #
def _build_convblock_kernel(n, h, w, eps):
    """Fused (conv3x3 + train-BN + ReLU) x 2, channel-major lane-dense layout.

    Column conventions (pixel index p = flattened (n, h+1, w+1) of the padded
    [N, H+2, W+2] grid):
      input slab  x   : width w_in  = w_out + 4*HALO, data at cols [2*HALO, ..)
      stage-1 act a1  : width w_mid = w_out + 2*HALO, col <-> p = col - HALO
      stage-2 out     : width w_out = round_up(Mp, 128), col <-> p
    Each stage reads its source at cols [HALO+off, HALO+off+width_out) for the
    nine stencil offsets `off`, so all accesses are static, in-bounds slices.
    """
    hp, wp = h + 2, w + 2
    mp = n * hp * wp                 # padded pixel count (incl. zero rings)
    m = n * h * w                    # valid pixel count (BN population)
    offs = [(kh - 1) * wp + (kw - 1) for kh in range(3) for kw in range(3)]
    assert max(abs(o) for o in offs) <= HALO, "spatial width too large for HALO"

    w_out = _round_up(mp, LANES)
    w_mid = w_out + 2 * HALO
    w_in = w_mid + 2 * HALO
    inv_m = 1.0 / m

    def conv3x3(w_taps_ref, src_ref, out_width):
        # 9 shifted slices of the resident slab, each one an MXU dot,
        # accumulated in f32 (review: "9 shifted matmuls accumulated").
        acc = None
        for k, off in enumerate(offs):
            xs = src_ref[:, HALO + off: HALO + off + out_width]
            d = jnp.dot(w_taps_ref[k], xs, preferred_element_type=jnp.float32)
            acc = d if acc is None else acc + d
        return acc                                  # [C_out, out_width] f32

    def bn_relu(y, mask, gamma, beta):
        # Training-mode BatchNorm over the m valid pixels (biased variance),
        # then affine + ReLU.  Everything outside the valid set is forced to 0
        # so it doubles as the zero padding ring for the next conv stage.
        mean = jnp.sum(y * mask, axis=1, keepdims=True) * inv_m
        cen = (y - mean) * mask                      # centered value, once
        var = jnp.sum(cen * cen, axis=1, keepdims=True) * inv_m
        out = cen * jax.lax.rsqrt(var + eps) * gamma + beta
        return jnp.maximum(out, 0.0) * mask

    def kernel(x_ref, w1_ref, w2_ref, g1_ref, b1_ref, g2_ref, b2_ref,
               mask_ref, o_ref, a1_ref):
        mask1 = mask_ref[...]                        # [1, w_mid]  f32
        mask2 = mask_ref[:, HALO: HALO + w_out]      # [1, w_out]

        # Stage 1: conv3x3 (conv bias omitted - cancels in train-mode BN).
        y1 = conv3x3(w1_ref, x_ref, w_mid)           # [Co, w_mid] f32
        a1 = bn_relu(y1, mask1, g1_ref[...], b1_ref[...])
        a1_ref[...] = a1.astype(a1_ref.dtype)        # stays in VMEM

        # Stage 2: reads the stage-1 activation straight from VMEM scratch.
        y2 = conv3x3(w2_ref, a1_ref, w_out)          # [Co, w_out] f32
        o_ref[...] = bn_relu(y2, mask2, g2_ref[...], b2_ref[...])

    return kernel, w_in, w_mid, w_out, mp


# -------------------------------- wrapper ---------------------------------- #
@functools.partial(jax.jit, static_argnames=("compute_dtype",))
def conv_block_forward(x_nchw, params, compute_dtype=jnp.bfloat16):
    """ConvBlock forward: x [N, Cin, H, W] -> [N, Cout, H, W] (float32)."""
    n, c_in, h, w = x_nchw.shape
    c_out = params["w1"].shape[0]

    kernel, w_in, w_mid, w_out, mp = _build_convblock_kernel(n, h, w, EPS)

    # Refuse shapes that cannot stay VMEM-resident (see header note / TODO).
    est_vmem = 4 * (c_in * w_in + 4 * c_out * w_mid + c_out * w_out + w_mid)
    if est_vmem > 24 * 1024 * 1024:
        raise NotImplementedError(
            "feature map too large for the single-block fused kernel; "
            "needs the M-tiled two-pass-BN variant")

    # Channel-major, zero-padded, lane-aligned input slab (no HBM im2col).
    xc = jnp.transpose(x_nchw, (1, 0, 2, 3))                    # [Cin,N,H,W]
    xp = jnp.pad(xc, ((0, 0), (0, 0), (1, 1), (1, 1)))          # zero ring
    xf = xp.reshape(c_in, mp)
    xe = jnp.pad(xf, ((0, 0), (2 * HALO, w_in - 2 * HALO - mp)))
    xe = xe.astype(compute_dtype)

    # Per-tap weight matrices: w_taps[k][co, ci] = w[co, ci, kh, kw], k=kh*3+kw.
    w1_taps = jnp.transpose(params["w1"], (2, 3, 0, 1)).reshape(9, c_out, c_in)
    w2_taps = jnp.transpose(params["w2"], (2, 3, 0, 1)).reshape(9, c_out, c_out)
    w1_taps = w1_taps.astype(compute_dtype)
    w2_taps = w2_taps.astype(compute_dtype)
    # NOTE: conv biases params["b1"]/["b2"] are intentionally NOT passed to the
    # kernel: a per-channel constant added before training-mode BatchNorm
    # cancels exactly in (y - mean).  Restore them for eval/running-stats BN.

    g1 = params["g1"].reshape(c_out, 1).astype(jnp.float32)
    be1 = params["be1"].reshape(c_out, 1).astype(jnp.float32)
    g2 = params["g2"].reshape(c_out, 1).astype(jnp.float32)
    be2 = params["be2"].reshape(c_out, 1).astype(jnp.float32)

    # 1.0 at the N*H*W valid pixels of the padded-flat index space.
    mask = jnp.pad(jnp.ones((h, w), jnp.float32), ((1, 1), (1, 1)))
    mask = jnp.tile(mask[None], (n, 1, 1)).reshape(1, mp)
    mask = jnp.pad(mask, ((0, 0), (HALO, w_mid - HALO - mp)))

    grid_spec = pltpu.PrefetchScalarGridSpec(
        num_scalar_prefetch=0,
        grid=(1,),
        in_specs=[
            pl.BlockSpec((c_in, w_in), lambda i: (0, 0)),
            pl.BlockSpec((9, c_out, c_in), lambda i: (0, 0, 0)),
            pl.BlockSpec((9, c_out, c_out), lambda i: (0, 0, 0)),
            pl.BlockSpec((c_out, 1), lambda i: (0, 0)),
            pl.BlockSpec((c_out, 1), lambda i: (0, 0)),
            pl.BlockSpec((c_out, 1), lambda i: (0, 0)),
            pl.BlockSpec((c_out, 1), lambda i: (0, 0)),
            pl.BlockSpec((1, w_mid), lambda i: (0, 0)),
        ],
        out_specs=pl.BlockSpec((c_out, w_out), lambda i: (0, 0)),
        scratch_shapes=[pltpu.VMEM((c_out, w_mid), compute_dtype)],
    )
    out_flat = pl.pallas_call(
        kernel,
        out_shape=jax.ShapeDtypeStruct((c_out, w_out), jnp.float32),
        grid_spec=grid_spec,
        compiler_params=pltpu.CompilerParams(
            dimension_semantics=("arbitrary",)),
    )(xe, w1_taps, w2_taps, g1, be1, g2, be2, mask)

    # Lane-dense channel-major result -> NCHW (cheap glue: slice + reshape).
    y = out_flat[:, :mp].reshape(c_out, n, h + 2, w + 2)[:, :, 1:-1, 1:-1]
    return jnp.transpose(y, (1, 0, 2, 3))


# --------------------------- pure-JAX reference ----------------------------- #
def _ref_stage(x_nhwc, w_oihw, bias, gamma, beta):
    w_hwio = jnp.transpose(w_oihw, (2, 3, 1, 0))
    y = jax.lax.conv_general_dilated(
        x_nhwc, w_hwio, window_strides=(1, 1), padding="SAME",
        dimension_numbers=("NHWC", "HWIO", "NHWC")) + bias
    mean = y.mean(axis=(0, 1, 2))
    var = ((y - mean) ** 2).mean(axis=(0, 1, 2))
    y_hat = (y - mean) / jnp.sqrt(var + EPS)
    return jnp.maximum(y_hat * gamma + beta, 0.0)


def conv_block_reference(x_nchw, params):
    x = jnp.transpose(x_nchw, (0, 2, 3, 1))
    y = _ref_stage(x, params["w1"], params["b1"], params["g1"], params["be1"])
    y = _ref_stage(y, params["w2"], params["b2"], params["g2"], params["be2"])
    return jnp.transpose(y, (0, 3, 1, 2))


# ---------------------------------- main ------------------------------------ #
if __name__ == "__main__":
    # One ExpandingDecoder level with channels=(8, 4): after the 2x2 up-conv
    # (8->4 ch) and concat with the 4-channel attention feature, the decoder
    # ConvBlock is ConvBlock(ch_in=8, ch_out=4) on a 16x16 map.
    ch_in, ch_out = 8, 4
    n, h, w = 2, 16, 16

    key = jax.random.PRNGKey(0)
    k_x, k_w1, k_b1, k_w2, k_b2 = jax.random.split(key, 5)

    x = jax.random.normal(k_x, (n, ch_in, h, w), dtype=jnp.float32)
    params = {
        # Conv2d(ch_in, ch_out, 3, padding=1, bias=True)
        "w1": 0.1 * jax.random.normal(k_w1, (ch_out, ch_in, 3, 3), jnp.float32),
        "b1": 0.1 * jax.random.normal(k_b1, (ch_out,), jnp.float32),
        # BatchNorm2d(ch_out) default init (training mode -> batch stats)
        "g1": jnp.ones((ch_out,), jnp.float32),
        "be1": jnp.zeros((ch_out,), jnp.float32),
        # Conv2d(ch_out, ch_out, 3, padding=1, bias=True)
        "w2": 0.1 * jax.random.normal(k_w2, (ch_out, ch_out, 3, 3), jnp.float32),
        "b2": 0.1 * jax.random.normal(k_b2, (ch_out,), jnp.float32),
        "g2": jnp.ones((ch_out,), jnp.float32),
        "be2": jnp.zeros((ch_out,), jnp.float32),
    }

    ref = jax.block_until_ready(conv_block_reference(x, params))

    # Strict semantics check: f32 operands must match the XLA reference tightly.
    out_f32 = jax.block_until_ready(
        conv_block_forward(x, params, compute_dtype=jnp.float32))
    assert out_f32.shape == (n, ch_out, h, w), out_f32.shape
    assert jnp.allclose(out_f32, ref, atol=1e-4, rtol=1e-4), \
        float(jnp.max(jnp.abs(out_f32 - ref)))

    # Production path: bf16 MXU operands, f32 accumulation / BN statistics.
    # The loose tolerance only reflects bf16 operand rounding; exact semantics
    # are pinned by the f32 check above.
    out_bf16 = jax.block_until_ready(
        conv_block_forward(x, params, compute_dtype=jnp.bfloat16))
    assert out_bf16.shape == (n, ch_out, h, w), out_bf16.shape
    assert jnp.allclose(out_bf16, ref, atol=1e-1, rtol=1e-1), \
        float(jnp.max(jnp.abs(out_bf16 - ref)))

    print("KERNEL_OK")
</pallas_src>

<mosaic_0001>
module attributes {stable_mosaic.version = 11 : i64} {
  func.func @kernel(%arg0: i32, %arg1: memref<8x1024xf32, #tpu.memory_space<vmem>>, %arg2: memref<9x4x8xf32, #tpu.memory_space<vmem>>, %arg3: memref<9x4x4xf32, #tpu.memory_space<vmem>>, %arg4: memref<4x1xf32, #tpu.memory_space<vmem>>, %arg5: memref<4x1xf32, #tpu.memory_space<vmem>>, %arg6: memref<4x1xf32, #tpu.memory_space<vmem>>, %arg7: memref<4x1xf32, #tpu.memory_space<vmem>>, %arg8: memref<1x896xf32, #tpu.memory_space<vmem>>, %arg9: memref<4x768xf32, #tpu.memory_space<vmem>>, %arg10: memref<4x896xf32, #tpu.memory_space<vmem>>) attributes {dimension_semantics = [#tpu.dimension_semantics<arbitrary>], iteration_bounds = array<i64: 1>, scalar_prefetch = 0 : i64, scratch_operands = 1 : i64, tpu.core_type = #tpu.core_type<tc>, window_params = [{pipeline_mode = #tpu.pipeline_mode<synchronous>, transform_indices = @transform_0, window_bounds = array<i64: 8, 1024>}, {pipeline_mode = #tpu.pipeline_mode<synchronous>, transform_indices = @transform_1, window_bounds = array<i64: 9, 4, 8>}, {pipeline_mode = #tpu.pipeline_mode<synchronous>, transform_indices = @transform_2, window_bounds = array<i64: 9, 4, 4>}, {pipeline_mode = #tpu.pipeline_mode<synchronous>, transform_indices = @transform_3, window_bounds = array<i64: 4, 1>}, {pipeline_mode = #tpu.pipeline_mode<synchronous>, transform_indices = @transform_4, window_bounds = array<i64: 4, 1>}, {pipeline_mode = #tpu.pipeline_mode<synchronous>, transform_indices = @transform_5, window_bounds = array<i64: 4, 1>}, {pipeline_mode = #tpu.pipeline_mode<synchronous>, transform_indices = @transform_6, window_bounds = array<i64: 4, 1>}, {pipeline_mode = #tpu.pipeline_mode<synchronous>, transform_indices = @transform_7, window_bounds = array<i64: 1, 896>}, {pipeline_mode = #tpu.pipeline_mode<synchronous>, transform_indices = @transform_8, window_bounds = array<i64: 4, 768>}]} {
    %c0 = arith.constant 0 : index
    %c0_0 = arith.constant 0 : index
    %0 = vector.load %arg8[%c0, %c0_0] : memref<1x896xf32, #tpu.memory_space<vmem>>, vector<1x896xf32>
    %c0_1 = arith.constant 0 : index
    %c64 = arith.constant 64 : index
    %1 = vector.load %arg8[%c0_1, %c64] : memref<1x896xf32, #tpu.memory_space<vmem>>, vector<1x768xf32>
    %c0_2 = arith.constant 0 : index
    %c45 = arith.constant 45 : index
    %2 = vector.load %arg1[%c0_2, %c45] : memref<8x1024xf32, #tpu.memory_space<vmem>>, vector<8x896xf32>
    %c0_3 = arith.constant 0 : index
    %c0_4 = arith.constant 0 : index
    %c0_5 = arith.constant 0 : index
    %3 = vector.load %arg2[%c0_3, %c0_4, %c0_5] : memref<9x4x8xf32, #tpu.memory_space<vmem>>, vector<1x4x8xf32>
    %4 = vector.shape_cast %3 : vector<1x4x8xf32> to vector<4x8xf32>
    %cst = arith.constant dense<0.000000e+00> : vector<4x896xf32>
    %5 = tpu.matmul %4, %2, %cst {dimension_numbers = #tpu.dot_dimension_numbers<[1], [0], [0], [1], [0, 0, 1, 1], [], []>} : vector<4x8xf32>, vector<8x896xf32>, vector<4x896xf32> -> vector<4x896xf32>
    %c0_6 = arith.constant 0 : index
    %c46 = arith.constant 46 : index
    %6 = vector.load %arg1[%c0_6, %c46] : memref<8x1024xf32, #tpu.memory_space<vmem>>, vector<8x896xf32>
    %c1 = arith.constant 1 : index
    %c0_7 = arith.constant 0 : index
    %c0_8 = arith.constant 0 : index
    %7 = vector.load %arg2[%c1, %c0_7, %c0_8] : memref<9x4x8xf32, #tpu.memory_space<vmem>>, vector<1x4x8xf32>
    %8 = vector.shape_cast %7 : vector<1x4x8xf32> to vector<4x8xf32>
    %cst_9 = arith.constant dense<0.000000e+00> : vector<4x896xf32>
    %9 = tpu.matmul %8, %6, %cst_9 {dimension_numbers = #tpu.dot_dimension_numbers<[1], [0], [0], [1], [0, 0, 1, 1], [], []>} : vector<4x8xf32>, vector<8x896xf32>, vector<4x896xf32> -> vector<4x896xf32>
    %10 = arith.addf %5, %9 : vector<4x896xf32>
    %c0_10 = arith.constant 0 : index
    %c47 = arith.constant 47 : index
    %11 = vector.load %arg1[%c0_10, %c47] : memref<8x1024xf32, #tpu.memory_space<vmem>>, vector<8x896xf32>
    %c2 = arith.constant 2 : index
    %c0_11 = arith.constant 0 : index
    %c0_12 = arith.constant 0 : index
    %12 = vector.load %arg2[%c2, %c0_11, %c0_12] : memref<9x4x8xf32, #tpu.memory_space<vmem>>, vector<1x4x8xf32>
    %13 = vector.shape_cast %12 : vector<1x4x8xf32> to vector<4x8xf32>
    %cst_13 = arith.constant dense<0.000000e+00> : vector<4x896xf32>
    %14 = tpu.matmul %13, %11, %cst_13 {dimension_numbers = #tpu.dot_dimension_numbers<[1], [0], [0], [1], [0, 0, 1, 1], [], []>} : vector<4x8xf32>, vector<8x896xf32>, vector<4x896xf32> -> vector<4x896xf32>
    %15 = arith.addf %10, %14 : vector<4x896xf32>
    %c0_14 = arith.constant 0 : index
    %c63 = arith.constant 63 : index
    %16 = vector.load %arg1[%c0_14, %c63] : memref<8x1024xf32, #tpu.memory_space<vmem>>, vector<8x896xf32>
    %c3 = arith.constant 3 : index
    %c0_15 = arith.constant 0 : index
    %c0_16 = arith.constant 0 : index
    %17 = vector.load %arg2[%c3, %c0_15, %c0_16] : memref<9x4x8xf32, #tpu.memory_space<vmem>>, vector<1x4x8xf32>
    %18 = vector.shape_cast %17 : vector<1x4x8xf32> to vector<4x8xf32>
    %cst_17 = arith.constant dense<0.000000e+00> : vector<4x896xf32>
    %19 = tpu.matmul %18, %16, %cst_17 {dimension_numbers = #tpu.dot_dimension_numbers<[1], [0], [0], [1], [0, 0, 1, 1], [], []>} : vector<4x8xf32>, vector<8x896xf32>, vector<4x896xf32> -> vector<4x896xf32>
    %20 = arith.addf %15, %19 : vector<4x896xf32>
    %c0_18 = arith.constant 0 : index
    %c64_19 = arith.constant 64 : index
    %21 = vector.load %arg1[%c0_18, %c64_19] : memref<8x1024xf32, #tpu.memory_space<vmem>>, vector<8x896xf32>
    %c4 = arith.constant 4 : index
    %c0_20 = arith.constant 0 : index
    %c0_21 = arith.constant 0 : index
    %22 = vector.load %arg2[%c4, %c0_20, %c0_21] : memref<9x4x8xf32, #tpu.memory_space<vmem>>, vector<1x4x8xf32>
    %23 = vector.shape_cast %22 : vector<1x4x8xf32> to vector<4x8xf32>
    %cst_22 = arith.constant dense<0.000000e+00> : vector<4x896xf32>
    %24 = tpu.matmul %23, %21, %cst_22 {dimension_numbers = #tpu.dot_dimension_numbers<[1], [0], [0], [1], [0, 0, 1, 1], [], []>} : vector<4x8xf32>, vector<8x896xf32>, vector<4x896xf32> -> vector<4x896xf32>
    %25 = arith.addf %20, %24 : vector<4x896xf32>
    %c0_23 = arith.constant 0 : index
    %c65 = arith.constant 65 : index
    %26 = vector.load %arg1[%c0_23, %c65] : memref<8x1024xf32, #tpu.memory_space<vmem>>, vector<8x896xf32>
    %c5 = arith.constant 5 : index
    %c0_24 = arith.constant 0 : index
    %c0_25 = arith.constant 0 : index
    %27 = vector.load %arg2[%c5, %c0_24, %c0_25] : memref<9x4x8xf32, #tpu.memory_space<vmem>>, vector<1x4x8xf32>
    %28 = vector.shape_cast %27 : vector<1x4x8xf32> to vector<4x8xf32>
    %cst_26 = arith.constant dense<0.000000e+00> : vector<4x896xf32>
    %29 = tpu.matmul %28, %26, %cst_26 {dimension_numbers = #tpu.dot_dimension_numbers<[1], [0], [0], [1], [0, 0, 1, 1], [], []>} : vector<4x8xf32>, vector<8x896xf32>, vector<4x896xf32> -> vector<4x896xf32>
    %30 = arith.addf %25, %29 : vector<4x896xf32>
    %c0_27 = arith.constant 0 : index
    %c81 = arith.constant 81 : index
    %31 = vector.load %arg1[%c0_27, %c81] : memref<8x1024xf32, #tpu.memory_space<vmem>>, vector<8x896xf32>
    %c6 = arith.constant 6 : index
    %c0_28 = arith.constant 0 : index
    %c0_29 = arith.constant 0 : index
    %32 = vector.load %arg2[%c6, %c0_28, %c0_29] : memref<9x4x8xf32, #tpu.memory_space<vmem>>, vector<1x4x8xf32>
    %33 = vector.shape_cast %32 : vector<1x4x8xf32> to vector<4x8xf32>
    %cst_30 = arith.constant dense<0.000000e+00> : vector<4x896xf32>
    %34 = tpu.matmul %33, %31, %cst_30 {dimension_numbers = #tpu.dot_dimension_numbers<[1], [0], [0], [1], [0, 0, 1, 1], [], []>} : vector<4x8xf32>, vector<8x896xf32>, vector<4x896xf32> -> vector<4x896xf32>
    %35 = arith.addf %30, %34 : vector<4x896xf32>
    %c0_31 = arith.constant 0 : index
    %c82 = arith.constant 82 : index
    %36 = vector.load %arg1[%c0_31, %c82] : memref<8x1024xf32, #tpu.memory_space<vmem>>, vector<8x896xf32>
    %c7 = arith.constant 7 : index
    %c0_32 = arith.constant 0 : index
    %c0_33 = arith.constant 0 : index
    %37 = vector.load %arg2[%c7, %c0_32, %c0_33] : memref<9x4x8xf32, #tpu.memory_space<vmem>>, vector<1x4x8xf32>
    %38 = vector.shape_cast %37 : vector<1x4x8xf32> to vector<4x8xf32>
    %cst_34 = arith.constant dense<0.000000e+00> : vector<4x896xf32>
    %39 = tpu.matmul %38, %36, %cst_34 {dimension_numbers = #tpu.dot_dimension_numbers<[1], [0], [0], [1], [0, 0, 1, 1], [], []>} : vector<4x8xf32>, vector<8x896xf32>, vector<4x896xf32> -> vector<4x896xf32>
    %40 = arith.addf %35, %39 : vector<4x896xf32>
    %c0_35 = arith.constant 0 : index
    %c83 = arith.constant 83 : index
    %41 = vector.load %arg1[%c0_35, %c83] : memref<8x1024xf32, #tpu.memory_space<vmem>>, vector<8x896xf32>
    %c8 = arith.constant 8 : index
    %c0_36 = arith.constant 0 : index
    %c0_37 = arith.constant 0 : index
    %42 = vector.load %arg2[%c8, %c0_36, %c0_37] : memref<9x4x8xf32, #tpu.memory_space<vmem>>, vector<1x4x8xf32>
    %43 = vector.shape_cast %42 : vector<1x4x8xf32> to vector<4x8xf32>
    %cst_38 = arith.constant dense<0.000000e+00> : vector<4x896xf32>
    %44 = tpu.matmul %43, %41, %cst_38 {dimension_numbers = #tpu.dot_dimension_numbers<[1], [0], [0], [1], [0, 0, 1, 1], [], []>} : vector<4x8xf32>, vector<8x896xf32>, vector<4x896xf32> -> vector<4x896xf32>
    %45 = arith.addf %40, %44 : vector<4x896xf32>
    %c0_39 = arith.constant 0 : index
    %c0_40 = arith.constant 0 : index
    %46 = vector.load %arg4[%c0_39, %c0_40] : memref<4x1xf32, #tpu.memory_space<vmem>>, vector<4x1xf32>
    %c0_41 = arith.constant 0 : index
    %c0_42 = arith.constant 0 : index
    %47 = vector.load %arg5[%c0_41, %c0_42] : memref<4x1xf32, #tpu.memory_space<vmem>>, vector<4x1xf32>
    %48 = vector.broadcast %0 : vector<1x896xf32> to vector<4x896xf32>
    %49 = arith.mulf %45, %48 : vector<4x896xf32>
    %cst_43 = arith.constant dense<0.000000e+00> : vector<4xf32>
    %50 = vector.multi_reduction <add>, %49, %cst_43 [1] : vector<4x896xf32> to vector<4xf32>
    %51 = vector.shape_cast %50 : vector<4xf32> to vector<4x1xf32>
    %cst_44 = arith.constant 0.001953125 : f32
    %52 = vector.broadcast %cst_44 : f32 to vector<4x1xf32>
    %53 = arith.mulf %51, %52 : vector<4x1xf32>
    %54 = vector.broadcast %53 : vector<4x1xf32> to vector<4x896xf32>
    %55 = arith.subf %45, %54 : vector<4x896xf32>
    %56 = vector.broadcast %0 : vector<1x896xf32> to vector<4x896xf32>
    %57 = arith.mulf %55, %56 : vector<4x896xf32>
    %58 = arith.mulf %57, %57 : vector<4x896xf32>
    %cst_45 = arith.constant dense<0.000000e+00> : vector<4xf32>
    %59 = vector.multi_reduction <add>, %58, %cst_45 [1] : vector<4x896xf32> to vector<4xf32>
    %60 = vector.shape_cast %59 : vector<4xf32> to vector<4x1xf32>
    %cst_46 = arith.constant 0.001953125 : f32
    %61 = vector.broadcast %cst_46 : f32 to vector<4x1xf32>
    %62 = arith.mulf %60, %61 : vector<4x1xf32>
    %cst_47 = arith.constant 9.99999974E-6 : f32
    %63 = vector.broadcast %cst_47 : f32 to vector<4x1xf32>
    %64 = arith.addf %62, %63 : vector<4x1xf32>
    %65 = math.rsqrt %64 : vector<4x1xf32>
    %66 = vector.broadcast %65 : vector<4x1xf32> to vector<4x896xf32>
    %67 = arith.mulf %57, %66 : vector<4x896xf32>
    %68 = vector.broadcast %46 : vector<4x1xf32> to vector<4x896xf32>
    %69 = arith.mulf %67, %68 : vector<4x896xf32>
    %70 = vector.broadcast %47 : vector<4x1xf32> to vector<4x896xf32>
    %71 = arith.addf %69, %70 : vector<4x896xf32>
    %cst_48 = arith.constant 0.000000e+00 : f32
    %72 = vector.broadcast %cst_48 : f32 to vector<4x896xf32>
    %73 = arith.maximumf %71, %72 : vector<4x896xf32>
    %74 = vector.broadcast %0 : vector<1x896xf32> to vector<4x896xf32>
    %75 = arith.mulf %73, %74 : vector<4x896xf32>
    %c0_49 = arith.constant 0 : index
    %c0_50 = arith.constant 0 : index
    %76 = vector.load %arg10[%c0_49, %c0_50] : memref<4x896xf32, #tpu.memory_space<vmem>>, vector<4x896xf32>
    tpu.vector_store %arg10[%c0_49, %c0_50], %75 {strides = array<i32>} : memref<4x896xf32, #tpu.memory_space<vmem>>, vector<4x896xf32>,
    %c0_51 = arith.constant 0 : index
    %c45_52 = arith.constant 45 : index
    %77 = vector.load %arg10[%c0_51, %c45_52] : memref<4x896xf32, #tpu.memory_space<vmem>>, vector<4x768xf32>
    %c0_53 = arith.constant 0 : index
    %c0_54 = arith.constant 0 : index
    %c0_55 = arith.constant 0 : index
    %78 = vector.load %arg3[%c0_53, %c0_54, %c0_55] : memref<9x4x4xf32, #tpu.memory_space<vmem>>, vector<1x4x4xf32>
    %79 = vector.shape_cast %78 : vector<1x4x4xf32> to vector<4x4xf32>
    %cst_56 = arith.constant dense<0.000000e+00> : vector<4x768xf32>
    %80 = tpu.matmul %79, %77, %cst_56 {dimension_numbers = #tpu.dot_dimension_numbers<[1], [0], [0], [1], [0, 0, 1, 1], [], []>} : vector<4x4xf32>, vector<4x768xf32>, vector<4x768xf32> -> vector<4x768xf32>
    %c0_57 = arith.constant 0 : index
    %c46_58 = arith.constant 46 : index
    %81 = vector.load %arg10[%c0_57, %c46_58] : memref<4x896xf32, #tpu.memory_space<vmem>>, vector<4x768xf32>
    %c1_59 = arith.constant 1 : index
    %c0_60 = arith.constant 0 : index
    %c0_61 = arith.constant 0 : index
    %82 = vector.load %arg3[%c1_59, %c0_60, %c0_61] : memref<9x4x4xf32, #tpu.memory_space<vmem>>, vector<1x4x4xf32>
    %83 = vector.shape_cast %82 : vector<1x4x4xf32> to vector<4x4xf32>
    %cst_62 = arith.constant dense<0.000000e+00> : vector<4x768xf32>
    %84 = tpu.matmul %83, %81, %cst_62 {dimension_numbers = #tpu.dot_dimension_numbers<[1], [0], [0], [1], [0, 0, 1, 1], [], []>} : vector<4x4xf32>, vector<4x768xf32>, vector<4x768xf32> -> vector<4x768xf32>
    %85 = arith.addf %80, %84 : vector<4x768xf32>
    %c0_63 = arith.constant 0 : index
    %c47_64 = arith.constant 47 : index
    %86 = vector.load %arg10[%c0_63, %c47_64] : memref<4x896xf32, #tpu.memory_space<vmem>>, vector<4x768xf32>
    %c2_65 = arith.constant 2 : index
    %c0_66 = arith.constant 0 : index
    %c0_67 = arith.constant 0 : index
    %87 = vector.load %arg3[%c2_65, %c0_66, %c0_67] : memref<9x4x4xf32, #tpu.memory_space<vmem>>, vector<1x4x4xf32>
    %88 = vector.shape_cast %87 : vector<1x4x4xf32> to vector<4x4xf32>
    %cst_68 = arith.constant dense<0.000000e+00> : vector<4x768xf32>
    %89 = tpu.matmul %88, %86, %cst_68 {dimension_numbers = #tpu.dot_dimension_numbers<[1], [0], [0], [1], [0, 0, 1, 1], [], []>} : vector<4x4xf32>, vector<4x768xf32>, vector<4x768xf32> -> vector<4x768xf32>
    %90 = arith.addf %85, %89 : vector<4x768xf32>
    %c0_69 = arith.constant 0 : index
    %c63_70 = arith.constant 63 : index
    %91 = vector.load %arg10[%c0_69, %c63_70] : memref<4x896xf32, #tpu.memory_space<vmem>>, vector<4x768xf32>
    %c3_71 = arith.constant 3 : index
    %c0_72 = arith.constant 0 : index
    %c0_73 = arith.constant 0 : index
    %92 = vector.load %arg3[%c3_71, %c0_72, %c0_73] : memref<9x4x4xf32, #tpu.memory_space<vmem>>, vector<1x4x4xf32>
    %93 = vector.shape_cast %92 : vector<1x4x4xf32> to vector<4x4xf32>
    %cst_74 = arith.constant dense<0.000000e+00> : vector<4x768xf32>
    %94 = tpu.matmul %93, %91, %cst_74 {dimension_numbers = #tpu.dot_dimension_numbers<[1], [0], [0], [1], [0, 0, 1, 1], [], []>} : vector<4x4xf32>, vector<4x768xf32>, vector<4x768xf32> -> vector<4x768xf32>
    %95 = arith.addf %90, %94 : vector<4x768xf32>
    %c0_75 = arith.constant 0 : index
    %c64_76 = arith.constant 64 : index
    %96 = vector.load %arg10[%c0_75, %c64_76] : memref<4x896xf32, #tpu.memory_space<vmem>>, vector<4x768xf32>
    %c4_77 = arith.constant 4 : index
    %c0_78 = arith.constant 0 : index
    %c0_79 = arith.constant 0 : index
    %97 = vector.load %arg3[%c4_77, %c0_78, %c0_79] : memref<9x4x4xf32, #tpu.memory_space<vmem>>, vector<1x4x4xf32>
    %98 = vector.shape_cast %97 : vector<1x4x4xf32> to vector<4x4xf32>
    %cst_80 = arith.constant dense<0.000000e+00> : vector<4x768xf32>
    %99 = tpu.matmul %98, %96, %cst_80 {dimension_numbers = #tpu.dot_dimension_numbers<[1], [0], [0], [1], [0, 0, 1, 1], [], []>} : vector<4x4xf32>, vector<4x768xf32>, vector<4x768xf32> -> vector<4x768xf32>
    %100 = arith.addf %95, %99 : vector<4x768xf32>
    %c0_81 = arith.constant 0 : index
    %c65_82 = arith.constant 65 : index
    %101 = vector.load %arg10[%c0_81, %c65_82] : memref<4x896xf32, #tpu.memory_space<vmem>>, vector<4x768xf32>
    %c5_83 = arith.constant 5 : index
    %c0_84 = arith.constant 0 : index
    %c0_85 = arith.constant 0 : index
    %102 = vector.load %arg3[%c5_83, %c0_84, %c0_85] : memref<9x4x4xf32, #tpu.memory_space<vmem>>, vector<1x4x4xf32>
    %103 = vector.shape_cast %102 : vector<1x4x4xf32> to vector<4x4xf32>
    %cst_86 = arith.constant dense<0.000000e+00> : vector<4x768xf32>
    %104 = tpu.matmul %103, %101, %cst_86 {dimension_numbers = #tpu.dot_dimension_numbers<[1], [0], [0], [1], [0, 0, 1, 1], [], []>} : vector<4x4xf32>, vector<4x768xf32>, vector<4x768xf32> -> vector<4x768xf32>
    %105 = arith.addf %100, %104 : vector<4x768xf32>
    %c0_87 = arith.constant 0 : index
    %c81_88 = arith.constant 81 : index
    %106 = vector.load %arg10[%c0_87, %c81_88] : memref<4x896xf32, #tpu.memory_space<vmem>>, vector<4x768xf32>
    %c6_89 = arith.constant 6 : index
    %c0_90 = arith.constant 0 : index
    %c0_91 = arith.constant 0 : index
    %107 = vector.load %arg3[%c6_89, %c0_90, %c0_91] : memref<9x4x4xf32, #tpu.memory_space<vmem>>, vector<1x4x4xf32>
    %108 = vector.shape_cast %107 : vector<1x4x4xf32> to vector<4x4xf32>
    %cst_92 = arith.constant dense<0.000000e+00> : vector<4x768xf32>
    %109 = tpu.matmul %108, %106, %cst_92 {dimension_numbers = #tpu.dot_dimension_numbers<[1], [0], [0], [1], [0, 0, 1, 1], [], []>} : vector<4x4xf32>, vector<4x768xf32>, vector<4x768xf32> -> vector<4x768xf32>
    %110 = arith.addf %105, %109 : vector<4x768xf32>
    %c0_93 = arith.constant 0 : index
    %c82_94 = arith.constant 82 : index
    %111 = vector.load %arg10[%c0_93, %c82_94] : memref<4x896xf32, #tpu.memory_space<vmem>>, vector<4x768xf32>
    %c7_95 = arith.constant 7 : index
    %c0_96 = arith.constant 0 : index
    %c0_97 = arith.constant 0 : index
    %112 = vector.load %arg3[%c7_95, %c0_96, %c0_97] : memref<9x4x4xf32, #tpu.memory_space<vmem>>, vector<1x4x4xf32>
    %113 = vector.shape_cast %112 : vector<1x4x4xf32> to vector<4x4xf32>
    %cst_98 = arith.constant dense<0.000000e+00> : vector<4x768xf32>
    %114 = tpu.matmul %113, %111, %cst_98 {dimension_numbers = #tpu.dot_dimension_numbers<[1], [0], [0], [1], [0, 0, 1, 1], [], []>} : vector<4x4xf32>, vector<4x768xf32>, vector<4x768xf32> -> vector<4x768xf32>
    %115 = arith.addf %110, %114 : vector<4x768xf32>
    %c0_99 = arith.constant 0 : index
    %c83_100 = arith.constant 83 : index
    %116 = vector.load %arg10[%c0_99, %c83_100] : memref<4x896xf32, #tpu.memory_space<vmem>>, vector<4x768xf32>
    %c8_101 = arith.constant 8 : index
    %c0_102 = arith.constant 0 : index
    %c0_103 = arith.constant 0 : index
    %117 = vector.load %arg3[%c8_101, %c0_102, %c0_103] : memref<9x4x4xf32, #tpu.memory_space<vmem>>, vector<1x4x4xf32>
    %118 = vector.shape_cast %117 : vector<1x4x4xf32> to vector<4x4xf32>
    %cst_104 = arith.constant dense<0.000000e+00> : vector<4x768xf32>
    %119 = tpu.matmul %118, %116, %cst_104 {dimension_numbers = #tpu.dot_dimension_numbers<[1], [0], [0], [1], [0, 0, 1, 1], [], []>} : vector<4x4xf32>, vector<4x768xf32>, vector<4x768xf32> -> vector<4x768xf32>
    %120 = arith.addf %115, %119 : vector<4x768xf32>
    %c0_105 = arith.constant 0 : index
    %c0_106 = arith.constant 0 : index
    %121 = vector.load %arg6[%c0_105, %c0_106] : memref<4x1xf32, #tpu.memory_space<vmem>>, vector<4x1xf32>
    %c0_107 = arith.constant 0 : index
    %c0_108 = arith.constant 0 : index
    %122 = vector.load %arg7[%c0_107, %c0_108] : memref<4x1xf32, #tpu.memory_space<vmem>>, vector<4x1xf32>
    %123 = vector.broadcast %1 : vector<1x768xf32> to vector<4x768xf32>
    %124 = arith.mulf %120, %123 : vector<4x768xf32>
    %cst_109 = arith.constant dense<0.000000e+00> : vector<4xf32>
    %125 = vector.multi_reduction <add>, %124, %cst_109 [1] : vector<4x768xf32> to vector<4xf32>
    %126 = vector.shape_cast %125 : vector<4xf32> to vector<4x1xf32>
    %cst_110 = arith.constant 0.001953125 : f32
    %127 = vector.broadcast %cst_110 : f32 to vector<4x1xf32>
    %128 = arith.mulf %126, %127 : vector<4x1xf32>
    %129 = vector.broadcast %128 : vector<4x1xf32> to vector<4x768xf32>
    %130 = arith.subf %120, %129 : vector<4x768xf32>
    %131 = vector.broadcast %1 : vector<1x768xf32> to vector<4x768xf32>
    %132 = arith.mulf %130, %131 : vector<4x768xf32>
    %133 = arith.mulf %132, %132 : vector<4x768xf32>
    %cst_111 = arith.constant dense<0.000000e+00> : vector<4xf32>
    %134 = vector.multi_reduction <add>, %133, %cst_111 [1] : vector<4x768xf32> to vector<4xf32>
    %135 = vector.shape_cast %134 : vector<4xf32> to vector<4x1xf32>
    %cst_112 = arith.constant 0.001953125 : f32
    %136 = vector.broadcast %cst_112 : f32 to vector<4x1xf32>
    %137 = arith.mulf %135, %136 : vector<4x1xf32>
    %cst_113 = arith.constant 9.99999974E-6 : f32
    %138 = vector.broadcast %cst_113 : f32 to vector<4x1xf32>
    %139 = arith.addf %137, %138 : vector<4x1xf32>
    %140 = math.rsqrt %139 : vector<4x1xf32>
    %141 = vector.broadcast %140 : vector<4x1xf32> to vector<4x768xf32>
    %142 = arith.mulf %132, %141 : vector<4x768xf32>
    %143 = vector.broadcast %121 : vector<4x1xf32> to vector<4x768xf32>
    %144 = arith.mulf %142, %143 : vector<4x768xf32>
    %145 = vector.broadcast %122 : vector<4x1xf32> to vector<4x768xf32>
    %146 = arith.addf %144, %145 : vector<4x768xf32>
    %cst_114 = arith.constant 0.000000e+00 : f32
    %147 = vector.broadcast %cst_114 : f32 to vector<4x768xf32>
    %148 = arith.maximumf %146, %147 : vector<4x768xf32>
    %149 = vector.broadcast %1 : vector<1x768xf32> to vector<4x768xf32>
    %150 = arith.mulf %148, %149 : vector<4x768xf32>
    %c0_115 = arith.constant 0 : index
    %c0_116 = arith.constant 0 : index
    %151 = vector.load %arg9[%c0_115, %c0_116] : memref<4x768xf32, #tpu.memory_space<vmem>>, vector<4x768xf32>
    tpu.vector_store %arg9[%c0_115, %c0_116], %150 {strides = array<i32>} : memref<4x768xf32, #tpu.memory_space<vmem>>, vector<4x768xf32>,
    return
  }
  func.func @transform_0(%arg0: i32) -> (i32, i32) {
    %c0_i32 = arith.constant 0 : i32
    %c0_i32_0 = arith.constant 0 : i32
    %c0_i32_1 = arith.constant 0 : i32
    return %c0_i32, %c0_i32_0 : i32, i32
  }
  func.func @transform_1(%arg0: i32) -> (i32, i32, i32) {
    %c0_i32 = arith.constant 0 : i32
    %c0_i32_0 = arith.constant 0 : i32
    %c0_i32_1 = arith.constant 0 : i32
    %c0_i32_2 = arith.constant 0 : i32
    return %c0_i32, %c0_i32_0, %c0_i32_1 : i32, i32, i32
  }
  func.func @transform_2(%arg0: i32) -> (i32, i32, i32) {
    %c0_i32 = arith.constant 0 : i32
    %c0_i32_0 = arith.constant 0 : i32
    %c0_i32_1 = arith.constant 0 : i32
    %c0_i32_2 = arith.constant 0 : i32
    return %c0_i32, %c0_i32_0, %c0_i32_1 : i32, i32, i32
  }
  func.func @transform_3(%arg0: i32) -> (i32, i32) {
    %c0_i32 = arith.constant 0 : i32
    %c0_i32_0 = arith.constant 0 : i32
    %c0_i32_1 = arith.constant 0 : i32
    return %c0_i32, %c0_i32_0 : i32, i32
  }
  func.func @transform_4(%arg0: i32) -> (i32, i32) {
    %c0_i32 = arith.constant 0 : i32
    %c0_i32_0 = arith.constant 0 : i32
    %c0_i32_1 = arith.constant 0 : i32
    return %c0_i32, %c0_i32_0 : i32, i32
  }
  func.func @transform_5(%arg0: i32) -> (i32, i32) {
    %c0_i32 = arith.constant 0 : i32
    %c0_i32_0 = arith.constant 0 : i32
    %c0_i32_1 = arith.constant 0 : i32
    return %c0_i32, %c0_i32_0 : i32, i32
  }
  func.func @transform_6(%arg0: i32) -> (i32, i32) {
    %c0_i32 = arith.constant 0 : i32
    %c0_i32_0 = arith.constant 0 : i32
    %c0_i32_1 = arith.constant 0 : i32
    return %c0_i32, %c0_i32_0 : i32, i32
  }
  func.func @transform_7(%arg0: i32) -> (i32, i32) {
    %c0_i32 = arith.constant 0 : i32
    %c0_i32_0 = arith.constant 0 : i32
    %c0_i32_1 = arith.constant 0 : i32
    return %c0_i32, %c0_i32_0 : i32, i32
  }
  func.func @transform_8(%arg0: i32) -> (i32, i32) {
    %c0_i32 = arith.constant 0 : i32
    %c0_i32_0 = arith.constant 0 : i32
    %c0_i32_1 = arith.constant 0 : i32
    return %c0_i32, %c0_i32_0 : i32, i32
  }
}

</mosaic_0001>

<bundles_post_ra>
// kernel: tile.6
= control target key start
LH: loop header
LB: loop body
LE: loop exit
PB: predicated region body
PF: predicated region fallthrough
CT: control target
= control target key end

     0   :  { %s64_s0 = inlined_call_operand.vmem [shape: f32[18,18], index: 0, kind: input, shape index: {}]   ;;  %s65_s1 = inlined_call_operand.vmem [shape: f32[2,1,1,18,1,18], index: 1, kind: output, shape index: {}]  }
   0x1   :  { %v4_v0 = vld [vmem:[%s64_s0] sm:$0xff]  ;;  %v21_v1 = vld [vmem:[%s64_s0 + $0x8] sm:$0xff]  ;;  %v24_v2 = vld [vmem:[%s64_s0 + $0x10] sm:$0xff] }
   0x2   :  { %5 = vst [vmem:[%s65_s1] sm:$0xff] %v4_v0  ;;  %20 = vst [vmem:[%s65_s1 + $0x18] sm:$0xff] %v4_v0 }
   0x3   :  { %22 = vst [vmem:[%s65_s1 + $0x8] sm:$0xff] %v21_v1  ;;  %23 = vst [vmem:[%s65_s1 + $0x20] sm:$0xff] %v21_v1 }
   0x4   :  { %25 = vst [vmem:[%s65_s1 + $0x10] sm:$0xff] %v24_v2  ;;  %26 = vst [vmem:[%s65_s1 + $0x28] sm:$0xff] %v24_v2 }

// kernel: tile.7
= control target key start
LH: loop header
LB: loop body
LE: loop exit
PB: predicated region body
PF: predicated region fallthrough
CT: control target
= control target key end

     0   :  { %vm9_vm0 = vcmask 15360   ;;  %vm36_vm1 = vcmask 48128   ;;  %s397_s14 = smov 126   ;;  %vm22_vm2 = vcmask 31744   ;;  %s398_s19 = smov 122   ;;  %vm50_vm3 = vcmask 64512   ;;  %s587_s0 = inlined_call_operand.vmem [shape: f32[2,1,1,18,1,18], index: 0, kind: input, shape index: {}]   ;;  %s588_s1 = inlined_call_operand.vmem [shape: f32[1,648], index: 1, kind: output, shape index: {}]  }
   0x1   :  { %v317_v0 = vld [vmem:[%s587_s0 + $0x7] sm:$0x1]   ;;  %v321_v3 = vld [vmem:[%s587_s0 + $0x1b] sm:$0x1]   ;;  %v319_v6 = vld [vmem:[%s587_s0 + $0xe] sm:$0x1]  }
   0x2   :  { %v318_v1 = vld [vmem:[%s587_s0 + $0x7] sm:$0x1]   ;;  %v322_v4 = vld [vmem:[%s587_s0 + $0x1b] sm:$0x1]   ;;  %v320_v7 = vld [vmem:[%s587_s0 + $0xe] sm:$0x1]  }
   0x3   :  { %v10_v2 = vsel %vm9_vm0, %v318_v1, %v317_v0  ;;  %v37_v5 = vsel %vm36_vm1, %v322_v4, %v321_v3  ;;  %v23_v8 = vsel %vm22_vm2, %v320_v7, %v319_v6  ;;  %v323_v9 = vld [vmem:[%s587_s0 + $0x22] sm:$0x1]   ;;  %vm54_vm4 = vcmask 80896   ;;  %v325_v12 = vld [vmem:[%s587_s0 + $0x29] sm:$0x1]   ;;  %s399_s28 = smov 124  }
   0x4   :  { %11 = vrot.lane.b32.xlu0 %v10_v2, %s397_s14  ;;  %38 = vrot.lane.b32.xlu1 %v37_v5, %s398_s19  ;;  %v324_v10 = vld [vmem:[%s587_s0 + $0x22] sm:$0x1]   ;;  %v326_v13 = vld [vmem:[%s587_s0 + $0x29] sm:$0x1]   ;;  %s400_s29 = smov 120   ;;  %s401_s3 = smov 118  }
   0x5   :  { %v51_v11 = vsel %vm50_vm3, %v324_v10, %v323_v9  ;;  %v65_v14 = vsel %vm54_vm4, %v326_v13, %v325_v12  ;;  %v327_v15 = vld [vmem:[%s587_s0 + $0x6] sm:$0x1]   ;;  %s402_s4 = smov 108   ;;  %v328_v16 = vld [vmem:[%s587_s0 + $0xd] sm:$0x1]   ;;  %s403_s9 = smov 106  }
   0x6   :  { %v329_v17 = vld [vmem:[%s587_s0 + $0x1a] sm:$0x1]   ;;  %s404_s10 = smov 104   ;;  %v330_v18 = vld [vmem:[%s587_s0 + $0x21] sm:$0x1]   ;;  %s405_s15 = smov 102  }
   0x7   :  { %v331_v19 = vld [vmem:[%s587_s0 + $0x28] sm:$0x1]   ;;  %s406_s16 = smov 100   ;;  %v332_v20 = vld [vmem:[%s587_s0 + $0x5] sm:$0x1]   ;;  %vm3_vm5 = vcmask 146432  }
   0x8   :  { %24 = vrot.lane.b32.xlu0 %v23_v8, %s399_s28  ;;  %52 = vrot.lane.b32.xlu1 %v51_v11, %s400_s29  ;;  %v333_v21 = vld [vmem:[%s587_s0 + $0xc] sm:$0x1]   ;;  %v2_v22 = vld [vmem:[%s587_s0] sm:$0x1]   ;;  %s407_s23 = smov 90   ;;  %s408_s24 = smov 88  }
   0x9   :  { %4 = vst.msk [vmem:[#allocation0] sm:$0x1] %vm3_vm5, %v2_v22   ;;  %v334_v23 = vld [vmem:[%s587_s0 + $0x19] sm:$0x1]   ;;  %v335_v24 = vld [vmem:[%s587_s0 + $0x20] sm:$0x1]  }
   0xa   :  { %s409_s29 = smov 86   ;;  %s410_s30 = smov 84   ;;  %v336_v25 = vld [vmem:[%s587_s0 + $0x27] sm:$0x1]   ;;  %v337_v26 = vld [vmem:[%s587_s0 + $0x4] sm:$0x1]  }
   0xb   :  { %s411_s6 = smov 82   ;;  %s412_s7 = smov 72   ;;  %v338_v27 = vld [vmem:[%s587_s0 + $0xb] sm:$0x1]   ;;  %v339_v28 = vld [vmem:[%s587_s0 + $0x18] sm:$0x1]  }
   0xc   :  { %66 = vrot.lane.b32.xlu0 %v65_v14, %s401_s3  ;;  %76 = vrot.lane.b32.xlu1 %v327_v15, %s402_s4  ;;  %s413_s12 = smov 70   ;;  %s414_s13 = smov 68   ;;  %v340_v29 = vld [vmem:[%s587_s0 + $0x1f] sm:$0x1]   ;;  %v341_v30 = vld [vmem:[%s587_s0 + $0x26] sm:$0x1]  }
   0xd   :  { %s415_s18 = smov 66   ;;  %s416_s19 = smov 64   ;;  %v342_v31 = vld [vmem:[%s587_s0 + $0x3] sm:$0x1]   ;;  %v343_v32 = vld [vmem:[%s587_s0 + $0xa] sm:$0x1]  }
   0xe   :  { %s418_s25 = smov 52   ;;  %v344_v33 = vld [vmem:[%s587_s0 + $0x11] sm:$0x1]   ;;  %v345_v34 = vld [vmem:[%s587_s0 + $0x1e] sm:$0x1]   ;;  %s420_s2 = smov 48  }
   0xf   :  { %v346_v35 = vld [vmem:[%s587_s0 + $0x25] sm:$0x1]   ;;  %v347_v36 = vld [vmem:[%s587_s0 + $0x2] sm:$0x1]   ;;  %s422_s8 = smov 36   ;;  %s424_s14 = smov 32  }
  0x10   :  { %82 = vrot.lane.b32.xlu0 %v328_v16, %s403_s9  ;;  %89 = vrot.lane.b32.xlu1 %v329_v17, %s404_s10  ;;  %v348_v37 = vld [vmem:[%s587_s0 + $0x9] sm:$0x1]   ;;  %v349_v38 = vld [vmem:[%s587_s0 + $0x10] sm:$0x1]   ;;  %s426_s20 = smov 28   ;;  %s428_s26 = smov 16  }
  0x11   :  { %v350_v39 = vld [vmem:[%s587_s0 + $0x1d] sm:$0x1]   ;;  %v351_v40 = vld [vmem:[%s587_s0 + $0x24] sm:$0x1]   ;;  %v352_v41 = vld [vmem:[%s587_s0 + $0x1] sm:$0x1]  }
  0x12   :  { %v353_v42 = vld [vmem:[%s587_s0 + $0x8] sm:$0x1]   ;;  %v354_v43 = vld [vmem:[%s587_s0 + $0xf] sm:$0x1]   ;;  %v355_v44 = vld [vmem:[%s587_s0 + $0x1c] sm:$0x1]  }
  0x13   :  { %s430_s3 = smov 12   ;;  %v356_v45 = vld [vmem:[%s587_s0 + $0x23] sm:$0x1]   ;;  %s431_s0 = smov 10   ;;  %vm13_vm6 = vcmask 130048   ;;  %vm16_vm7 = vcmask 1048560  }
  0x14   :  { %96 = vrot.lane.b32.xlu0 %v330_v18, %s405_s15  ;;  %103 = vrot.lane.b32.xlu1 %v331_v19, %s406_s16  ;;  %vm40_vm8 = vcmask 97280   ;;  %vm26_vm9 = vcmask 113664   ;;  %vm29_vm10 = vcmask 1048544   ;;  %vm43_vm11 = vcmask 1048528  }
  0x15   :  { %vm57_vm12 = vcmask 1048512   ;;  %vm71_vm13 = vcmask 1048496   ;;  %vm78_vm14 = vcmask 1032032   ;;  %vm84_vm15 = vcmask 1015632  }
  0x16   :  { %vm91_vm0 = vcmask 999232   ;;  %vm98_vm1 = vcmask 982832   ;;  %vm105_vm2 = vcmask 966432   ;;  %vm125_vm5 = vcmask 851632  }
  0x18   :  { %110 = vrot.lane.b32.xlu0 %v332_v20, %s407_s23  ;;  %116 = vrot.lane.b32.xlu1 %v333_v21, %s408_s24  ;;  %s417_s24 = smov 54  }
  0x1c   :  { %123 = vrot.lane.b32.xlu0 %v334_v23, %s409_s29  ;;  %130 = vrot.lane.b32.xlu1 %v335_v24, %s410_s30  ;;  %s419_s30 = smov 50  }
  0x20   :  { %137 = vrot.lane.b32.xlu0 %v336_v25, %s411_s6  ;;  %144 = vrot.lane.b32.xlu1 %v337_v26, %s412_s7  ;;  %s421_s7 = smov 46  }
  0x24   :  { %150 = vrot.lane.b32.xlu0 %v338_v27, %s413_s12  ;;  %157 = vrot.lane.b32.xlu1 %v339_v28, %s414_s13  ;;  %s423_s13 = smov 34  }
  0x28   :  { %164 = vrot.lane.b32.xlu0 %v340_v29, %s415_s18  ;;  %171 = vrot.lane.b32.xlu1 %v341_v30, %s416_s19  ;;  %s425_s19 = smov 30  }
  0x2c   :  { %178 = vrot.lane.b32.xlu0 %v342_v31, %s417_s24  ;;  %184 = vrot.lane.b32.xlu1 %v343_v32, %s418_s25  ;;  %s427_s25 = smov 18  }
  0x30   :  { %191 = vrot.lane.b32.xlu0 %v344_v33, %s419_s30  ;;  %198 = vrot.lane.b32.xlu1 %v345_v34, %s420_s2  ;;  %s429_s2 = smov 14  }
  0x34   :  { %205 = vrot.lane.b32.xlu0 %v346_v35, %s421_s7  ;;  %212 = vrot.lane.b32.xlu1 %v347_v36, %s422_s8 }
  0x38   :  { %218 = vrot.lane.b32.xlu0 %v348_v37, %s423_s13  ;;  %225 = vrot.lane.b32.xlu1 %v349_v38, %s424_s14 }
  0x3c   :  { %232 = vrot.lane.b32.xlu0 %v350_v39, %s425_s19  ;;  %239 = vrot.lane.b32.xlu1 %v351_v40, %s426_s20 }
  0x40   :  { %246 = vrot.lane.b32.xlu0 %v352_v41, %s427_s25  ;;  %252 = vrot.lane.b32.xlu1 %v353_v42, %s428_s26 }
  0x44   :  { %259 = vrot.lane.b32.xlu0 %v354_v43, %s429_s2  ;;  %266 = vrot.lane.b32.xlu1 %v355_v44, %s430_s3 }
  0x48   :  { %273 = vrot.lane.b32.xlu0 %v356_v45, %s431_s0 }
  0x76   :  { %v12_v46 = vpop.permute.xlu0 %11   ;;  %v39_v47 = vpop.permute.xlu1 %38  }
  0x77   :  { %15 = vst.msk [vmem:[#allocation0 + $0x8] sm:$0x1] %vm13_vm6, %v12_v46   ;;  %vm132_vm6 = vcmask 835232  }
  0x78   :  { %17 = vst.msk [vmem:[#allocation0] sm:$0x1] %vm16_vm7, %v12_v46   ;;  %vm139_vm7 = vcmask 818832  }
  0x79   :  { %42 = vst.msk [vmem:[#allocation0 + $0x18] sm:$0x1] %vm40_vm8, %v39_v47   ;;  %vm146_vm8 = vcmask 736832  }
  0x7a   :  { %v25_v48 = vpop.permute.xlu0 %24   ;;  %v53_v49 = vpop.permute.xlu1 %52  }
  0x7b   :  { %28 = vst.msk [vmem:[#allocation0 + $0x10] sm:$0x1] %vm26_vm9, %v25_v48   ;;  %vm152_vm9 = vcmask 720432  }
  0x7c   :  { %31 = vst.msk [vmem:[#allocation0 + $0x8] sm:$0x1] %vm29_vm10, %v25_v48   ;;  %vm159_vm10 = vcmask 704032  }
  0x7d   :  { %45 = vst.msk [vmem:[#allocation0 + $0x10] sm:$0x1] %vm43_vm11, %v39_v47   ;;  %vm166_vm11 = vcmask 687632  }
  0x7e   :  { %56 = vst.msk [vmem:[#allocation0 + $0x20] sm:$0x1] %vm54_vm4, %v53_v49   ;;  %v67_v50 = vpop.permute.xlu0 %66   ;;  %v77_v51 = vpop.permute.xlu1 %76   ;;  %vm118_vm4 = vcmask 868032  }
  0x7f   :  { %59 = vst.msk [vmem:[#allocation0 + $0x18] sm:$0x1] %vm57_vm12, %v53_v49   ;;  %vm173_vm12 = vcmask 671232  }
  0x80   :  { %70 = vst.msk [vmem:[#allocation0 + $0x28] sm:$0x1] %vm50_vm3, %v67_v50   ;;  %vm112_vm3 = vcmask 884432  }
  0x81   :  { %73 = vst.msk [vmem:[#allocation0 + $0x20] sm:$0x1] %vm71_vm13, %v67_v50   ;;  %vm180_vm13 = vcmask 589232  }
  0x82   :  { %79 = vst.msk [vmem:[#allocation0] sm:$0x1] %vm78_vm14, %v77_v51   ;;  %v83_v52 = vpop.permute.xlu0 %82   ;;  %v90_v53 = vpop.permute.xlu1 %89   ;;  %vm186_vm14 = vcmask 572832  }
  0x83   :  { %86 = vst.msk [vmem:[#allocation0 + $0x8] sm:$0x1] %vm84_vm15, %v83_v52   ;;  %vm193_vm15 = vcmask 556432  }
  0x84   :  { %93 = vst.msk [vmem:[#allocation0 + $0x10] sm:$0x1] %vm91_vm0, %v90_v53   ;;  %vm200_vm0 = vcmask 540032  }
  0x86   :  { %v97_v55 = vpop.permute.xlu0 %96   ;;  %v104_v56 = vpop.permute.xlu1 %103  }
  0x87   :  { %v308_v54 = vld [vmem:[#allocation0 + $0x28] sm:$0x1]  ;;  %100 = vst.msk [vmem:[#allocation0 + $0x18] sm:$0x1] %vm98_vm1, %v97_v55   ;;  %vm207_vm1 = vcmask 523632  }
  0x88   :  { %361 = vst [vmem:[%s588_s1 + $0x5] sm:$0x1] %v308_v54  ;;  %107 = vst.msk [vmem:[#allocation0 + $0x20] sm:$0x1] %vm105_vm2, %v104_v56   ;;  %vm214_vm2 = vcmask 441632  }
  0x8a   :  { %v111_v57 = vpop.permute.xlu0 %110   ;;  %v117_v58 = vpop.permute.xlu1 %116  }
  0x8b   :  { %113 = vst.msk [vmem:[#allocation0] sm:$0x1] %vm112_vm3, %v111_v57   ;;  %vm220_vm3 = vcmask 425232  }
  0x8c   :  { %120 = vst.msk [vmem:[#allocation0 + $0x8] sm:$0x1] %vm118_vm4, %v117_v58   ;;  %vm227_vm4 = vcmask 408832  }
  0x8e   :  { %v124_v59 = vpop.permute.xlu0 %123   ;;  %v131_v60 = vpop.permute.xlu1 %130  }
  0x8f   :  { %127 = vst.msk [vmem:[#allocation0 + $0x10] sm:$0x1] %vm125_vm5, %v124_v59   ;;  %vm234_vm5 = vcmask 392432  }
  0x90   :  { %134 = vst.msk [vmem:[#allocation0 + $0x18] sm:$0x1] %vm132_vm6, %v131_v60   ;;  %vm241_vm6 = vcmask 376032  }
  0x92   :  { %v138_v61 = vpop.permute.xlu0 %137   ;;  %v145_v62 = vpop.permute.xlu1 %144  }
  0x93   :  { %141 = vst.msk [vmem:[#allocation0 + $0x20] sm:$0x1] %vm139_vm7, %v138_v61   ;;  %vm248_vm7 = vcmask 294032  }
  0x94   :  { %147 = vst.msk [vmem:[#allocation0] sm:$0x1] %vm146_vm8, %v145_v62   ;;  %vm254_vm8 = vcmask 277632  }
  0x96   :  { %v151_v63 = vpop.permute.xlu0 %150   ;;  %v158_v0 = vpop.permute.xlu1 %157  }
  0x97   :  { %154 = vst.msk [vmem:[#allocation0 + $0x8] sm:$0x1] %vm152_vm9, %v151_v63   ;;  %vm261_vm9 = vcmask 261232  }
  0x98   :  { %161 = vst.msk [vmem:[#allocation0 + $0x10] sm:$0x1] %vm159_vm10, %v158_v0   ;;  %vm268_vm10 = vcmask 244832  }
  0x9a   :  { %v165_v1 = vpop.permute.xlu0 %164   ;;  %v172_v2 = vpop.permute.xlu1 %171  }
  0x9b   :  { %168 = vst.msk [vmem:[#allocation0 + $0x18] sm:$0x1] %vm166_vm11, %v165_v1   ;;  %vm275_vm11 = vcmask 228432  }
  0x9c   :  { %175 = vst.msk [vmem:[#allocation0 + $0x20] sm:$0x1] %vm173_vm12, %v172_v2  }
  0x9e   :  { %v179_v3 = vpop.permute.xlu0 %178   ;;  %v185_v4 = vpop.permute.xlu1 %184  }
  0x9f   :  { %181 = vst.msk [vmem:[#allocation0] sm:$0x1] %vm180_vm13, %v179_v3  }
  0xa0   :  { %188 = vst.msk [vmem:[#allocation0 + $0x8] sm:$0x1] %vm186_vm14, %v185_v4  }
  0xa2   :  { %v192_v5 = vpop.permute.xlu0 %191   ;;  %v199_v6 = vpop.permute.xlu1 %198  }
  0xa3   :  { %195 = vst.msk [vmem:[#allocation0 + $0x10] sm:$0x1] %vm193_vm15, %v192_v5  }
  0xa4   :  { %202 = vst.msk [vmem:[#allocation0 + $0x18] sm:$0x1] %vm200_vm0, %v199_v6  }
  0xa6   :  { %v206_v7 = vpop.permute.xlu0 %205   ;;  %v213_v8 = vpop.permute.xlu1 %212  }
  0xa7   :  { %209 = vst.msk [vmem:[#allocation0 + $0x20] sm:$0x1] %vm207_vm1, %v206_v7  }
  0xa8   :  { %215 = vst.msk [vmem:[#allocation0] sm:$0x1] %vm214_vm2, %v213_v8  }
  0xaa   :  { %v219_v9 = vpop.permute.xlu0 %218   ;;  %v226_v10 = vpop.permute.xlu1 %225  }
  0xab   :  { %222 = vst.msk [vmem:[#allocation0 + $0x8] sm:$0x1] %vm220_vm3, %v219_v9  }
  0xac   :  { %229 = vst.msk [vmem:[#allocation0 + $0x10] sm:$0x1] %vm227_vm4, %v226_v10  }
  0xae   :  { %v233_v11 = vpop.permute.xlu0 %232   ;;  %v240_v12 = vpop.permute.xlu1 %239  }
  0xaf   :  { %236 = vst.msk [vmem:[#allocation0 + $0x18] sm:$0x1] %vm234_vm5, %v233_v11  }
  0xb0   :  { %243 = vst.msk [vmem:[#allocation0 + $0x20] sm:$0x1] %vm241_vm6, %v240_v12  }
  0xb2   :  { %v247_v13 = vpop.permute.xlu0 %246   ;;  %v253_v14 = vpop.permute.xlu1 %252  }
  0xb3   :  { %249 = vst.msk [vmem:[#allocation0] sm:$0x1] %vm248_vm7, %v247_v13  }
  0xb4   :  { %256 = vst.msk [vmem:[#allocation0 + $0x8] sm:$0x1] %vm254_vm8, %v253_v14  }
  0xb6   :  { %v260_v15 = vpop.permute.xlu0 %259   ;;  %v267_v16 = vpop.permute.xlu1 %266  }
  0xb7   :  { %263 = vst.msk [vmem:[#allocation0 + $0x10] sm:$0x1] %vm261_vm9, %v260_v15  }
  0xb8   :  { %270 = vst.msk [vmem:[#allocation0 + $0x18] sm:$0x1] %vm268_vm10, %v267_v16  }
  0xba   :  { %v281_v17 = vld [vmem:[#allocation0] sm:$0x1]  ;;  %v274_v18 = vpop.permute.xlu0 %273  }
  0xbb   :  { %283 = vst [vmem:[%s588_s1] sm:$0x1] %v281_v17  ;;  %v285_v19 = vld [vmem:[#allocation0 + $0x8] sm:$0x1]  ;;  %277 = vst.msk [vmem:[#allocation0 + $0x20] sm:$0x1] %vm275_vm11, %v274_v18  }
  0xbc   :  { %357 = vst [vmem:[%s588_s1 + $0x1] sm:$0x1] %v285_v19 }
  0xbe   :  { %v290_v20 = vld [vmem:[#allocation0 + $0x10] sm:$0x1] }
  0xbf   :  { %358 = vst [vmem:[%s588_s1 + $0x2] sm:$0x1] %v290_v20  ;;  %v296_v21 = vld [vmem:[#allocation0 + $0x18] sm:$0x1] }
  0xc0   :  { %359 = vst [vmem:[%s588_s1 + $0x3] sm:$0x1] %v296_v21 }
  0xc2   :  { %v302_v22 = vld [vmem:[#allocation0 + $0x20] sm:$0x1] }
  0xc3   :  { %360 = vst [vmem:[%s588_s1 + $0x4] sm:$0x1] %v302_v22 }

// kernel: conv_block_forward.1
= control target key start
LH: loop header
LB: loop body
LE: loop exit
PB: predicated region body
PF: predicated region fallthrough
CT: control target
= control target key end

     0   :  { %v6008_v2 = vmov 0.0   ;;  %s6009_s9 = smov 82   ;;  %s6010_s22 = smov 83   ;;  %vm66_vm0 = vcmask 670720   ;;  %vm81_vm1 = vcmask 64512   ;;  %vm384_vm2 = vcmask 678912   ;;  %s6961_s0 = inlined_call_operand.vmem [shape: f32[8,1024], index: 0, kind: input, shape index: {}]   ;;  %s6962_s1 = inlined_call_operand.vmem [shape: f32[9,4,8], index: 1, kind: input, shape index: {}]   ;;  %s6963_s7 = inlined_call_operand.vmem [shape: f32[1,896], index: 7, kind: input, shape index: {}]   ;;  %s6964_s3 = inlined_call_operand.vmem [shape: f32[4,1], index: 3, kind: input, shape index: {}]   ;;  %s6965_s4 = inlined_call_operand.vmem [shape: f32[4,1], index: 4, kind: input, shape index: {}]   ;;  %s6966_s2 = inlined_call_operand.vmem [shape: f32[9,4,4], index: 2, kind: input, shape index: {}]   ;;  %s6967_s5 = inlined_call_operand.vmem [shape: f32[4,1], index: 5, kind: input, shape index: {}]   ;;  %s6968_s6 = inlined_call_operand.vmem [shape: f32[4,1], index: 6, kind: input, shape index: {}]   ;;  %s6969_s8 = inlined_call_operand.vmem [shape: f32[4,768], index: 8, kind: output, shape index: {}]  }
   0x1   :  { %v6068_v0 = vld [vmem:[%s6961_s0 + $0x8] sm:$0xff]  ;;  %v6073_v1 = vld [vmem:[%s6961_s0] sm:$0xff]  ;;  %149 = vmatprep.mubr.f32.mxu1 %v6008_v2  ;;  %785 = vmatprep.mubr.f32.mxu0 %v6008_v2  ;;  %v6084_v3 = vld [vmem:[%s6961_s0 + $0x10] sm:$0xff]  ;;  %s6012_s23 = smov 65   ;;  %s6013_s24 = smov 64   ;;  %vm6018_vm3 = vmmov 0  }
   0x2   :  { %52 = vrot.lane.b32.xlu0 %v6068_v0, %s6009_s9  ;;  %50 = vrot.lane.b32.xlu1 %v6073_v1, %s6009_s9  ;;  %v6089_v4 = vld [vmem:[%s6961_s0 + $0x18] sm:$0xff]  ;;  %v6098_v5 = vld [vmem:[%s6961_s0 + $0x20] sm:$0xff]  ;;  %s6014_s25 = smov 63   ;;  %s6015_s26 = smov 47   ;;  %vm703_vm4 = vcmask 662528   ;;  %vm1029_vm5 = vcmask 531456  }
   0x3   :  { %v6103_v6 = vld [vmem:[%s6961_s0 + $0x28] sm:$0xff]  ;;  %v6112_v7 = vld [vmem:[%s6961_s0 + $0x30] sm:$0xff]  ;;  %v6117_v8 = vld [vmem:[%s6961_s0 + $0x38] sm:$0xff]  ;;  %s6011_s0 = smov 81   ;;  %s6016_s27 = smov 46   ;;  %vm1355_vm6 = vcmask 523264  }
   0x4   :  { %v5679_v14 = vld [vmem:[%s6962_s1 + $0x4] sm:$0xf]  ;;  %s6017_s30 = smov 45   ;;  %v39_v31 = vld [vmem:[%s6962_s1] sm:$0xf]  ;;  %vm1681_vm7 = vcmask 515072  }
   0x5   :  { %v5688_v44 = vld [vmem:[%s6962_s1 + $0x8] sm:$0xf]  ;;  %v5693_v60 = vld [vmem:[%s6962_s1 + $0xc] sm:$0xf]  ;;  %vm2007_vm8 = vcmask 384000   ;;  %vm2333_vm9 = vcmask 375808  }
   0x6   :  { %54 = vrot.lane.b32.xlu0 %v6084_v3, %s6009_s9  ;;  %56 = vrot.lane.b32.xlu1 %v6089_v4, %s6009_s9  ;;  %vm2659_vm10 = vcmask 367616   ;;  %vm3012_vm11 = vcmask 1043456   ;;  %vm3163_vm12 = vcmask 31744  }
   0xa   :  { %58 = vrot.lane.b32.xlu0 %v6098_v5, %s6009_s9  ;;  %60 = vrot.lane.b32.xlu1 %v6103_v6, %s6009_s9 }
   0xe   :  { %62 = vrot.lane.b32.xlu0 %v6112_v7, %s6009_s9  ;;  %64 = vrot.lane.b32.xlu1 %v6117_v8, %s6009_s9 }
  0x12   :  { %370 = vrot.lane.b32.xlu0 %v6068_v0, %s6010_s22  ;;  %372 = vrot.lane.b32.xlu1 %v6084_v3, %s6010_s22 }
  0x16   :  { %368 = vrot.lane.b32.xlu0 %v6073_v1, %s6010_s22  ;;  %374 = vrot.lane.b32.xlu1 %v6089_v4, %s6010_s22 }
  0x1a   :  { %376 = vrot.lane.b32.xlu0 %v6098_v5, %s6010_s22  ;;  %378 = vrot.lane.b32.xlu1 %v6103_v6, %s6010_s22 }
  0x1e   :  { %380 = vrot.lane.b32.xlu0 %v6112_v7, %s6010_s22  ;;  %689 = vrot.lane.b32.xlu1 %v6068_v0, %s6011_s0 }
  0x22   :  { %691 = vrot.lane.b32.xlu0 %v6084_v3, %s6011_s0  ;;  %687 = vrot.lane.b32.xlu1 %v6073_v1, %s6011_s0 }
  0x26   :  { %382 = vrot.lane.b32.xlu0 %v6117_v8, %s6010_s22  ;;  %697 = vrot.lane.b32.xlu1 %v6103_v6, %s6011_s0 }
  0x2a   :  { %699 = vrot.lane.b32.xlu0 %v6112_v7, %s6011_s0  ;;  %693 = vrot.lane.b32.xlu1 %v6089_v4, %s6011_s0 }
  0x2e   :  { %695 = vrot.lane.b32.xlu0 %v6098_v5, %s6011_s0  ;;  %1015 = vrot.lane.b32.xlu1 %v6068_v0, %s6012_s23 }
  0x32   :  { %1017 = vrot.lane.b32.xlu0 %v6084_v3, %s6012_s23  ;;  %1013 = vrot.lane.b32.xlu1 %v6073_v1, %s6012_s23 }
  0x36   :  { %701 = vrot.lane.b32.xlu0 %v6117_v8, %s6011_s0  ;;  %1023 = vrot.lane.b32.xlu1 %v6103_v6, %s6012_s23 }
  0x3a   :  { %1025 = vrot.lane.b32.xlu0 %v6112_v7, %s6012_s23  ;;  %1019 = vrot.lane.b32.xlu1 %v6089_v4, %s6012_s23 }
  0x3e   :  { %1021 = vrot.lane.b32.xlu0 %v6098_v5, %s6012_s23  ;;  %1341 = vrot.lane.b32.xlu1 %v6068_v0, %s6013_s24 }
  0x42   :  { %1343 = vrot.lane.b32.xlu0 %v6084_v3, %s6013_s24  ;;  %1339 = vrot.lane.b32.xlu1 %v6073_v1, %s6013_s24 }
  0x46   :  { %1027 = vrot.lane.b32.xlu0 %v6117_v8, %s6012_s23  ;;  %1349 = vrot.lane.b32.xlu1 %v6103_v6, %s6013_s24 }
  0x4a   :  { %1351 = vrot.lane.b32.xlu0 %v6112_v7, %s6013_s24  ;;  %1345 = vrot.lane.b32.xlu1 %v6089_v4, %s6013_s24 }
  0x4e   :  { %1347 = vrot.lane.b32.xlu0 %v6098_v5, %s6013_s24  ;;  %1667 = vrot.lane.b32.xlu1 %v6068_v0, %s6014_s25 }
  0x52   :  { %1669 = vrot.lane.b32.xlu0 %v6084_v3, %s6014_s25  ;;  %1665 = vrot.lane.b32.xlu1 %v6073_v1, %s6014_s25 }
  0x56   :  { %1353 = vrot.lane.b32.xlu0 %v6117_v8, %s6013_s24  ;;  %1675 = vrot.lane.b32.xlu1 %v6103_v6, %s6014_s25 }
  0x5a   :  { %1677 = vrot.lane.b32.xlu0 %v6112_v7, %s6014_s25  ;;  %1671 = vrot.lane.b32.xlu1 %v6089_v4, %s6014_s25 }
  0x5e   :  { %1673 = vrot.lane.b32.xlu0 %v6098_v5, %s6014_s25  ;;  %1993 = vrot.lane.b32.xlu1 %v6068_v0, %s6015_s26 }
  0x62   :  { %1995 = vrot.lane.b32.xlu0 %v6084_v3, %s6015_s26  ;;  %1991 = vrot.lane.b32.xlu1 %v6073_v1, %s6015_s26 }
  0x66   :  { %1679 = vrot.lane.b32.xlu0 %v6117_v8, %s6014_s25  ;;  %2001 = vrot.lane.b32.xlu1 %v6103_v6, %s6015_s26 }
  0x6a   :  { %2003 = vrot.lane.b32.xlu0 %v6112_v7, %s6015_s26  ;;  %1997 = vrot.lane.b32.xlu1 %v6089_v4, %s6015_s26 }
  0x6e   :  { %1999 = vrot.lane.b32.xlu0 %v6098_v5, %s6015_s26  ;;  %2319 = vrot.lane.b32.xlu1 %v6068_v0, %s6016_s27 }
  0x72   :  { %2321 = vrot.lane.b32.xlu0 %v6084_v3, %s6016_s27  ;;  %2317 = vrot.lane.b32.xlu1 %v6073_v1, %s6016_s27 }
  0x74   :  { %v53_v9 = vpop.permute.xlu0 %52  ;;  %v51_v10 = vpop.permute.xlu1 %50 }
  0x75   :  { %v67_v15 = vsel %vm66_vm0, %v51_v10, %v53_v9 }
  0x76   :  { %2005 = vrot.lane.b32.xlu0 %v6117_v8, %s6015_s26  ;;  %2327 = vrot.lane.b32.xlu1 %v6103_v6, %s6016_s27 }
  0x78   :  { %v55_v11 = vpop.permute.xlu0 %54  ;;  %v57_v12 = vpop.permute.xlu1 %56 }
  0x79   :  { %v68_v13 = vsel %vm66_vm0, %v53_v9, %v55_v11  ;;  %v69_v19 = vsel %vm66_vm0, %v55_v11, %v57_v12 }
  0x7a   :  { %85 = vmatprep.subr.mxu1 %v68_v13  ;;  %2329 = vrot.lane.b32.xlu0 %v6112_v7, %s6016_s27  ;;  %v5698_v13 = vld [vmem:[%s6962_s1 + $0x10] sm:$0xf] }
  0x7b   :  { %2323 = vrot.lane.b32.xlu1 %v6089_v4, %s6016_s27  ;;  %86 = vmatpush1.msra.mxu1 %v67_v15 }
  0x7c   :  { %v59_v16 = vpop.permute.xlu0 %58  ;;  %v61_v17 = vpop.permute.xlu1 %60  ;;  %5680 = vmatmul.mubr.msk.f32.vlgmr.msra.gmra.mrb[0].mxu1 %vm81_vm1, %v5679_v14 }
  0x7d   :  { %v70_v18 = vsel %vm66_vm0, %v57_v12, %v59_v16  ;;  %220 = vmatprep.mubr.f32.mxu1 %v6008_v2  ;;  %v71_v23 = vsel %vm66_vm0, %v59_v16, %v61_v17 }
  0x7e   :  { %2325 = vrot.lane.b32.xlu0 %v6098_v5, %s6016_s27  ;;  %156 = vmatprep.subr.mxu1 %v70_v18 }
  0x7f   :  { %2645 = vrot.lane.b32.xlu1 %v6068_v0, %s6017_s30  ;;  %157 = vmatpush1.msra.mxu1 %v69_v19 }
  0x80   :  { %v63_v20 = vpop.permute.xlu0 %62  ;;  %v65_v21 = vpop.permute.xlu1 %64  ;;  %5681 = vmatmul.mubr.msk.f32.vlgmr.msra.gmra.mrb[2].mxu1 %vm81_vm1, %v5679_v14 }
  0x81   :  { %v72_v22 = vsel %vm66_vm0, %v61_v17, %v63_v20  ;;  %291 = vmatprep.mubr.f32.mxu1 %v6008_v2  ;;  %v73_v24 = vsel %vm66_vm0, %v63_v20, %v65_v21 }
  0x82   :  { %2647 = vrot.lane.b32.xlu0 %v6084_v3, %s6017_s30  ;;  %227 = vmatprep.subr.mxu1 %v72_v22 }
  0x83   :  { %2643 = vrot.lane.b32.xlu1 %v6073_v1, %s6017_s30  ;;  %228 = vmatpush1.msra.mxu1 %v71_v23 }
  0x84   :  { %v371_v25 = vpop.permute.xlu0 %370  ;;  %5830 = vmatprep.subr.mxu1 %v6008_v2  ;;  %v373_v26 = vpop.permute.xlu1 %372  ;;  %5682 = vmatmul.mubr.msk.f32.vlgmr.msra.gmra.mrb[4].mxu1 %vm81_vm1, %v5679_v14 }
  0x85   :  { %5831 = vmatpush3.msra.mxu1 %v73_v24  ;;  %v386_v27 = vsel %vm384_vm2, %v371_v25, %v373_v26  ;;  %5832 = vmatprep.mubr.msk.f32.mxu1 %vm6018_vm3, %v6008_v2 }
  0x86   :  { %2331 = vrot.lane.b32.xlu0 %v6117_v8, %s6016_s27  ;;  %402 = vmatprep.subr.mxu1 %v386_v27 }
  0x87   :  { %2649 = vrot.lane.b32.xlu1 %v6089_v4, %s6017_s30 }
  0x88   :  { %v369_v28 = vpop.permute.xlu0 %368  ;;  %v375_v29 = vpop.permute.xlu1 %374  ;;  %5833 = vmatmul.mubr.msk.f32.vlgmr.msra.gmra.mrb[6].mxu1 %vm81_vm1, %v5679_v14 }
  0x89   :  { %v385_v30 = vsel %vm384_vm2, %v369_v28, %v371_v25  ;;  %466 = vmatprep.mubr.f32.mxu1 %v6008_v2  ;;  %v387_v35 = vsel %vm384_vm2, %v373_v26, %v375_v29 }
  0x8a   :  { %2651 = vrot.lane.b32.xlu0 %v6098_v5, %s6017_s30  ;;  %403 = vmatpush1.msra.mxu1 %v385_v30 }
  0x8b   :  { %2653 = vrot.lane.b32.xlu1 %v6103_v6, %s6017_s30 }
  0x8c   :  { %v377_v32 = vpop.permute.xlu0 %376  ;;  %v379_v33 = vpop.permute.xlu1 %378  ;;  %5684 = vmatmul.mubr.msk.f32.vlgmr.msra.gmra.mrb[0].mxu1 %vm81_vm1, %v39_v31 }
  0x8d   :  { %v388_v34 = vsel %vm384_vm2, %v375_v29, %v377_v32  ;;  %537 = vmatprep.mubr.f32.mxu1 %v6008_v2  ;;  %v389_v39 = vsel %vm384_vm2, %v377_v32, %v379_v33  ;;  %v5703_v29 = vld [vmem:[%s6962_s1 + $0x14] sm:$0xf] }
  0x8e   :  { %2655 = vrot.lane.b32.xlu0 %v6112_v7, %s6017_s30  ;;  %473 = vmatprep.subr.mxu1 %v388_v34 }
  0x8f   :  { %2657 = vrot.lane.b32.xlu1 %v6117_v8, %s6017_s30  ;;  %474 = vmatpush1.msra.mxu1 %v387_v35 }
  0x90   :  { %v381_v36 = vpop.permute.xlu0 %380  ;;  %v690_v37 = vpop.permute.xlu1 %689  ;;  %5685 = vmatmul.mubr.msk.f32.vlgmr.msra.gmra.mrb[2].mxu1 %vm81_vm1, %v39_v31 }
  0x91   :  { %v390_v38 = vsel %vm384_vm2, %v379_v33, %v381_v36  ;;  %608 = vmatprep.mubr.f32.mxu1 %v6008_v2 }
  0x92   :  { %544 = vmatprep.subr.mxu1 %v390_v38 }
  0x93   :  { %545 = vmatpush1.msra.mxu1 %v389_v39 }
  0x94   :  { %v692_v40 = vpop.permute.xlu0 %691  ;;  %v688_v41 = vpop.permute.xlu1 %687  ;;  %5835 = vmatprep.subr.mxu1 %v6008_v2  ;;  %5686 = vmatmul.mubr.msk.f32.vlgmr.msra.gmra.mrb[4].mxu1 %vm81_vm1, %v39_v31 }
  0x95   :  { %v705_v42 = vsel %vm703_vm4, %v690_v37, %v692_v40  ;;  %v704_v43 = vsel %vm703_vm4, %v688_v41, %v690_v37  ;;  %5837 = vmatprep.mubr.msk.f32.mxu1 %vm6018_vm3, %v6008_v2 }
  0x96   :  { %721 = vmatprep.subr.mxu0 %v705_v42 }
  0x97   :  { %722 = vmatpush1.msra.mxu0 %v704_v43 }
  0x98   :  { %v383_v45 = vpop.permute.xlu0 %382  ;;  %v698_v46 = vpop.permute.xlu1 %697  ;;  %5689 = vmatmul.mubr.msk.f32.vlgmr.msra.gmra.mrb[0].mxu0 %vm81_vm1, %v5688_v44 }
  0x99   :  { %v391_v47 = vsel %vm384_vm2, %v381_v36, %v383_v45  ;;  %927 = vmatprep.mubr.f32.mxu0 %v6008_v2  ;;  %v5708_v45 = vld [vmem:[%s6962_s1 + $0x18] sm:$0xf] }
  0x9a   :  { %5836 = vmatpush3.msra.mxu1 %v391_v47 }
  0x9b   :  { %5838 = vmatmul.mubr.msk.f32.vlgmr.msra.gmra.mrb[6].mxu1 %vm81_vm1, %v39_v31 }
  0x9c   :  { %v700_v48 = vpop.permute.xlu0 %699  ;;  %v694_v49 = vpop.permute.xlu1 %693  ;;  %856 = vmatprep.mubr.f32.mxu1 %v6008_v2 }
  0x9d   :  { %v709_v50 = vsel %vm703_vm4, %v698_v46, %v700_v48  ;;  %v706_v55 = vsel %vm703_vm4, %v692_v40, %v694_v49 }
  0x9e   :  { %863 = vmatprep.subr.mxu0 %v709_v50 }
  0xa0   :  { %v696_v51 = vpop.permute.xlu0 %695  ;;  %v1016_v52 = vpop.permute.xlu1 %1015 }
  0xa1   :  { %v707_v53 = vsel %vm703_vm4, %v694_v49, %v696_v51  ;;  %v708_v54 = vsel %vm703_vm4, %v696_v51, %v698_v46 }
  0xa2   :  { %792 = vmatprep.subr.mxu1 %v707_v53  ;;  %864 = vmatpush1.msra.mxu0 %v708_v54 }
  0xa3   :  { %793 = vmatpush1.msra.mxu1 %v706_v55  ;;  %5691 = vmatmul.mubr.msk.f32.vlgmr.msra.gmra.mrb[2].mxu0 %vm81_vm1, %v5688_v44 }
  0xa4   :  { %v1018_v56 = vpop.permute.xlu0 %1017  ;;  %v1014_v57 = vpop.permute.xlu1 %1013  ;;  %5840 = vmatprep.subr.mxu1 %v6008_v2  ;;  %5690 = vmatmul.mubr.msk.f32.vlgmr.msra.gmra.mrb[2].mxu1 %vm81_vm1, %v5688_v44 }
  0xa5   :  { %v1030_v58 = vsel %vm1029_vm5, %v1014_v57, %v1016_v52  ;;  %v1031_v59 = vsel %vm1029_vm5, %v1016_v52, %v1018_v56  ;;  %1111 = vmatprep.mubr.f32.mxu0 %v6008_v2  ;;  %5842 = vmatprep.mubr.msk.f32.mxu1 %vm6018_vm3, %v6008_v2 }
  0xa6   :  { %1047 = vmatprep.subr.mxu0 %v1031_v59 }
  0xa7   :  { %1048 = vmatpush1.msra.mxu0 %v1030_v58 }
  0xa8   :  { %v702_v61 = vpop.permute.xlu0 %701  ;;  %v1024_v62 = vpop.permute.xlu1 %1023  ;;  %5694 = vmatmul.mubr.msk.f32.vlgmr.msra.gmra.mrb[0].mxu0 %vm81_vm1, %v5693_v60 }
  0xa9   :  { %v710_v63 = vsel %vm703_vm4, %v700_v48, %v702_v61  ;;  %1253 = vmatprep.mubr.f32.mxu0 %v6008_v2  ;;  %v5713_v61 = vld [vmem:[%s6962_s1 + $0x1c] sm:$0xf] }
  0xaa   :  { %5841 = vmatpush3.msra.mxu1 %v710_v63 }
  0xab   :  { %5843 = vmatmul.mubr.msk.f32.vlgmr.msra.gmra.mrb[6].mxu1 %vm81_vm1, %v5688_v44 }
  0xac   :  { %v1026_v0 = vpop.permute.xlu0 %1025  ;;  %v1020_v1 = vpop.permute.xlu1 %1019  ;;  %1182 = vmatprep.mubr.f32.mxu1 %v6008_v2 }
  0xad   :  { %v1035_v3 = vsel %vm1029_vm5, %v1024_v62, %v1026_v0  ;;  %v1032_v8 = vsel %vm1029_vm5, %v1018_v56, %v1020_v1 }
  0xae   :  { %1189 = vmatprep.subr.mxu0 %v1035_v3 }
  0xb0   :  { %v1022_v4 = vpop.permute.xlu0 %1021  ;;  %v1342_v5 = vpop.permute.xlu1 %1341 }
  0xb1   :  { %v1033_v6 = vsel %vm1029_vm5, %v1020_v1, %v1022_v4  ;;  %v1034_v7 = vsel %vm1029_vm5, %v1022_v4, %v1024_v62 }
  0xb2   :  { %1118 = vmatprep.subr.mxu1 %v1033_v6  ;;  %1190 = vmatpush1.msra.mxu0 %v1034_v7 }
  0xb3   :  { %1119 = vmatpush1.msra.mxu1 %v1032_v8  ;;  %5696 = vmatmul.mubr.msk.f32.vlgmr.msra.gmra.mrb[2].mxu0 %vm81_vm1, %v5693_v60 }
  0xb4   :  { %v1344_v9 = vpop.permute.xlu0 %1343  ;;  %v1340_v10 = vpop.permute.xlu1 %1339  ;;  %5845 = vmatprep.subr.mxu1 %v6008_v2  ;;  %5695 = vmatmul.mubr.msk.f32.vlgmr.msra.gmra.mrb[2].mxu1 %vm81_vm1, %v5693_v60 }
  0xb5   :  { %v1356_v11 = vsel %vm1355_vm6, %v1340_v10, %v1342_v5  ;;  %v1357_v12 = vsel %vm1355_vm6, %v1342_v5, %v1344_v9  ;;  %1437 = vmatprep.mubr.f32.mxu0 %v6008_v2  ;;  %5847 = vmatprep.mubr.msk.f32.mxu1 %vm6018_vm3, %v6008_v2 }
  0xb6   :  { %1373 = vmatprep.subr.mxu0 %v1357_v12 }
  0xb7   :  { %1374 = vmatpush1.msra.mxu0 %v1356_v11 }
  0xb8   :  { %v1028_v14 = vpop.permute.xlu0 %1027  ;;  %v1350_v15 = vpop.permute.xlu1 %1349  ;;  %5699 = vmatmul.mubr.msk.f32.vlgmr.msra.gmra.mrb[0].mxu0 %vm81_vm1, %v5698_v13 }
  0xb9   :  { %v1036_v16 = vsel %vm1029_vm5, %v1026_v0, %v1028_v14  ;;  %1579 = vmatprep.mubr.f32.mxu0 %v6008_v2 }
  0xba   :  { %5846 = vmatpush3.msra.mxu1 %v1036_v16 }
  0xbb   :  { %5848 = vmatmul.mubr.msk.f32.vlgmr.msra.gmra.mrb[6].mxu1 %vm81_vm1, %v5693_v60 }
  0xbc   :  { %v1352_v17 = vpop.permute.xlu0 %1351  ;;  %v1346_v18 = vpop.permute.xlu1 %1345  ;;  %1508 = vmatprep.mubr.f32.mxu1 %v6008_v2 }
  0xbd   :  { %v1361_v19 = vsel %vm1355_vm6, %v1350_v15, %v1352_v17  ;;  %v1358_v24 = vsel %vm1355_vm6, %v1344_v9, %v1346_v18 }
  0xbe   :  { %1515 = vmatprep.subr.mxu0 %v1361_v19 }
  0xc0   :  { %v1348_v20 = vpop.permute.xlu0 %1347  ;;  %v1668_v21 = vpop.permute.xlu1 %1667 }
  0xc1   :  { %v1359_v22 = vsel %vm1355_vm6, %v1346_v18, %v1348_v20  ;;  %v1360_v23 = vsel %vm1355_vm6, %v1348_v20, %v1350_v15 }
  0xc2   :  { %1444 = vmatprep.subr.mxu1 %v1359_v22  ;;  %1516 = vmatpush1.msra.mxu0 %v1360_v23 }
  0xc3   :  { %1445 = vmatpush1.msra.mxu1 %v1358_v24  ;;  %5701 = vmatmul.mubr.msk.f32.vlgmr.msra.gmra.mrb[2].mxu0 %vm81_vm1, %v5698_v13 }
  0xc4   :  { %v1670_v25 = vpop.permute.xlu0 %1669  ;;  %v1666_v26 = vpop.permute.xlu1 %1665  ;;  %5850 = vmatprep.subr.mxu1 %v6008_v2  ;;  %5700 = vmatmul.mubr.msk.f32.vlgmr.msra.gmra.mrb[2].mxu1 %vm81_vm1, %v5698_v13 }
  0xc5   :  { %v1682_v27 = vsel %vm1681_vm7, %v1666_v26, %v1668_v21  ;;  %v1683_v28 = vsel %vm1681_vm7, %v1668_v21, %v1670_v25  ;;  %1763 = vmatprep.mubr.f32.mxu0 %v6008_v2  ;;  %5852 = vmatprep.mubr.msk.f32.mxu1 %vm6018_vm3, %v6008_v2 }
  0xc6   :  { %1699 = vmatprep.subr.mxu0 %v1683_v28 }
  0xc7   :  { %1700 = vmatpush1.msra.mxu0 %v1682_v27 }
  0xc8   :  { %v1354_v30 = vpop.permute.xlu0 %1353  ;;  %v1676_v31 = vpop.permute.xlu1 %1675  ;;  %5704 = vmatmul.mubr.msk.f32.vlgmr.msra.gmra.mrb[0].mxu0 %vm81_vm1, %v5703_v29 }
  0xc9   :  { %v1362_v32 = vsel %vm1355_vm6, %v1352_v17, %v1354_v30  ;;  %1905 = vmatprep.mubr.f32.mxu0 %v6008_v2 }
  0xca   :  { %5851 = vmatpush3.msra.mxu1 %v1362_v32 }
  0xcb   :  { %5853 = vmatmul.mubr.msk.f32.vlgmr.msra.gmra.mrb[6].mxu1 %vm81_vm1, %v5698_v13  ;;  %v5718_v13 = vld [vmem:[%s6962_s1 + $0x20] sm:$0xf] }
  0xcc   :  { %v1678_v33 = vpop.permute.xlu0 %1677  ;;  %v1672_v34 = vpop.permute.xlu1 %1671  ;;  %1834 = vmatprep.mubr.f32.mxu1 %v6008_v2 }
  0xcd   :  { %v1687_v35 = vsel %vm1681_vm7, %v1676_v31, %v1678_v33  ;;  %v1684_v40 = vsel %vm1681_vm7, %v1670_v25, %v1672_v34 }
  0xce   :  { %1841 = vmatprep.subr.mxu0 %v1687_v35 }
  0xd0   :  { %v1674_v36 = vpop.permute.xlu0 %1673  ;;  %v1994_v37 = vpop.permute.xlu1 %1993 }
  0xd1   :  { %v1686_v38 = vsel %vm1681_vm7, %v1674_v36, %v1676_v31  ;;  %v1685_v39 = vsel %vm1681_vm7, %v1672_v34, %v1674_v36  ;;  %v2970_v31 = vlaneseq  ;;  %v29_v34 = vld [vmem:[%s6963_s7] sm:$0xff] }
  0xd2   :  { %1770 = vmatprep.subr.mxu1 %v1685_v39  ;;  %1842 = vmatpush1.msra.mxu0 %v1686_v38 }
  0xd3   :  { %1771 = vmatpush1.msra.mxu1 %v1684_v40  ;;  %5706 = vmatmul.mubr.msk.f32.vlgmr.msra.gmra.mrb[2].mxu0 %vm81_vm1, %v5703_v29  ;;  %v6431_v32 = vshrl.u32 %v2970_v31, 7 }
  0xd4   :  { %v1996_v41 = vpop.permute.xlu0 %1995  ;;  %v1992_v42 = vpop.permute.xlu1 %1991  ;;  %5855 = vmatprep.subr.mxu1 %v6008_v2  ;;  %5705 = vmatmul.mubr.msk.f32.vlgmr.msra.gmra.mrb[2].mxu1 %vm81_vm1, %v5703_v29 }
  0xd5   :  { %v2008_v43 = vsel %vm2007_vm8, %v1992_v42, %v1994_v37  ;;  %v2009_v44 = vsel %vm2007_vm8, %v1994_v37, %v1996_v41  ;;  %2089 = vmatprep.mubr.f32.mxu0 %v6008_v2  ;;  %5857 = vmatprep.mubr.msk.f32.mxu1 %vm6018_vm3, %v6008_v2  ;;  %v2976_v35 = vsub.s32 1, %v6431_v32 }
  0xd6   :  { %2025 = vmatprep.subr.mxu0 %v2009_v44 }
  0xd7   :  { %2026 = vmatpush1.msra.mxu0 %v2008_v43  ;;  %v6444_v38 = vrot.slane %v29_v34, %v2976_v35  ;;  %v2984_v43 = vsub.s32 3, %v6431_v32 }
  0xd8   :  { %v1680_v46 = vpop.permute.xlu0 %1679  ;;  %v2002_v47 = vpop.permute.xlu1 %2001  ;;  %5709 = vmatmul.mubr.msk.f32.vlgmr.msra.gmra.mrb[0].mxu0 %vm81_vm1, %v5708_v45 }
  0xd9   :  { %v1688_v48 = vsel %vm1681_vm7, %v1678_v33, %v1680_v46  ;;  %2231 = vmatprep.mubr.f32.mxu0 %v6008_v2  ;;  %v2972_v33 = vsub.s32 0, %v6431_v32 }
  0xda   :  { %5856 = vmatpush3.msra.mxu1 %v1688_v48 }
  0xdb   :  { %5858 = vmatmul.mubr.msk.f32.vlgmr.msra.gmra.mrb[6].mxu1 %vm81_vm1, %v5703_v29  ;;  %v6440_v36 = vrot.slane %v29_v34, %v2972_v33 }
  0xdc   :  { %v2004_v49 = vpop.permute.xlu0 %2003  ;;  %v1998_v50 = vpop.permute.xlu1 %1997  ;;  %2160 = vmatprep.mubr.f32.mxu1 %v6008_v2 }
  0xdd   :  { %v2013_v51 = vsel %vm2007_vm8, %v2002_v47, %v2004_v49  ;;  %v2010_v56 = vsel %vm2007_vm8, %v1996_v41, %v1998_v50  ;;  %v2980_v41 = vsub.s32 2, %v6431_v32 }
  0xde   :  { %2167 = vmatprep.subr.mxu0 %v2013_v51 }
  0xdf   :  { %v6452_v46 = vrot.slane %v29_v34, %v2980_v41 }
  0xe0   :  { %v2000_v52 = vpop.permute.xlu0 %1999  ;;  %v2320_v53 = vpop.permute.xlu1 %2319 }
  0xe1   :  { %v2012_v54 = vsel %vm2007_vm8, %v2000_v52, %v2002_v47  ;;  %v2011_v55 = vsel %vm2007_vm8, %v1998_v50, %v2000_v52  ;;  %v6456_v47 = vrot.slane %v29_v34, %v2984_v43  ;;  %v2988_v50 = vsub.s32 4, %v6431_v32 }
  0xe2   :  { %2096 = vmatprep.subr.mxu1 %v2011_v55  ;;  %2168 = vmatpush1.msra.mxu0 %v2012_v54  ;;  %v2992_v52 = vsub.s32 5, %v6431_v32  ;;  %v2996_v55 = vsub.s32 6, %v6431_v32 }
  0xe3   :  { %2097 = vmatpush1.msra.mxu1 %v2010_v56  ;;  %5711 = vmatmul.mubr.msk.f32.vlgmr.msra.gmra.mrb[2].mxu0 %vm81_vm1, %v5708_v45 }
  0xe4   :  { %v2322_v57 = vpop.permute.xlu0 %2321  ;;  %v2318_v58 = vpop.permute.xlu1 %2317  ;;  %5860 = vmatprep.subr.mxu1 %v6008_v2  ;;  %5710 = vmatmul.mubr.msk.f32.vlgmr.msra.gmra.mrb[2].mxu1 %vm81_vm1, %v5708_v45 }
  0xe5   :  { %v2334_v59 = vsel %vm2333_vm9, %v2318_v58, %v2320_v53  ;;  %v2335_v60 = vsel %vm2333_vm9, %v2320_v53, %v2322_v57  ;;  %2415 = vmatprep.mubr.f32.mxu0 %v6008_v2  ;;  %5862 = vmatprep.mubr.msk.f32.mxu1 %vm6018_vm3, %v6008_v2 }
  0xe6   :  { %2351 = vmatprep.subr.mxu0 %v2335_v60 }
  0xe7   :  { %2352 = vmatpush1.msra.mxu0 %v2334_v59  ;;  %v6468_v59 = vrot.slane %v29_v34, %v2988_v50 }
  0xe8   :  { %v2006_v62 = vpop.permute.xlu0 %2005  ;;  %v2328_v63 = vpop.permute.xlu1 %2327  ;;  %5714 = vmatmul.mubr.msk.f32.vlgmr.msra.gmra.mrb[0].mxu0 %vm81_vm1, %v5713_v61 }
  0xe9   :  { %v2014_v0 = vsel %vm2007_vm8, %v2004_v49, %v2006_v62  ;;  %2557 = vmatprep.mubr.f32.mxu0 %v6008_v2 }
  0xea   :  { %5861 = vmatpush3.msra.mxu1 %v2014_v0  ;;  %v6473_v0 = vrot.slane %v29_v34, %v2992_v52 }
  0xeb   :  { %5863 = vmatmul.mubr.msk.f32.vlgmr.msra.gmra.mrb[6].mxu1 %vm81_vm1, %v5708_v45 }
  0xec   :  { %v2330_v1 = vpop.permute.xlu0 %2329  ;;  %2486 = vmatprep.mubr.f32.mxu1 %v6008_v2 }
  0xed   :  { %v2324_v3 = vpop.permute.xlu1 %2323  ;;  %v2339_v4 = vsel %vm2333_vm9, %v2328_v63, %v2330_v1 }
  0xee   :  { %2493 = vmatprep.subr.mxu0 %v2339_v4  ;;  %v2336_v9 = vsel %vm2333_vm9, %v2322_v57, %v2324_v3 }
  0xf0   :  { %v2326_v5 = vpop.permute.xlu0 %2325 }
  0xf1   :  { %v2338_v6 = vsel %vm2333_vm9, %v2326_v5, %v2328_v63  ;;  %v2646_v7 = vpop.permute.xlu1 %2645  ;;  %v2337_v8 = vsel %vm2333_vm9, %v2324_v3, %v2326_v5  ;;  %v6477_v3 = vrot.slane %v29_v34, %v2996_v55 }
  0xf2   :  { %2422 = vmatprep.subr.mxu1 %v2337_v8  ;;  %2494 = vmatpush1.msra.mxu0 %v2338_v6 }
  0xf3   :  { %2423 = vmatpush1.msra.mxu1 %v2336_v9  ;;  %5716 = vmatmul.mubr.msk.f32.vlgmr.msra.gmra.mrb[2].mxu0 %vm81_vm1, %v5713_v61 }
  0xf4   :  { %v2648_v10 = vpop.permute.xlu0 %2647  ;;  %2741 = vmatprep.mubr.f32.mxu0 %v6008_v2  ;;  %5715 = vmatmul.mubr.msk.f32.vlgmr.msra.gmra.mrb[2].mxu1 %vm81_vm1, %v5713_v61 }
  0xf5   :  { %v2644_v11 = vpop.permute.xlu1 %2643  ;;  %v2661_v12 = vsel %vm2659_vm10, %v2646_v7, %v2648_v10  ;;  %5865 = vmatprep.subr.mxu1 %v6008_v2  ;;  %5867 = vmatprep.mubr.msk.f32.mxu1 %vm6018_vm3, %v6008_v2 }
  0xf6   :  { %v2660_v14 = vsel %vm2659_vm10, %v2644_v11, %v2646_v7  ;;  %2677 = vmatprep.subr.mxu0 %v2661_v12 }
  0xf7   :  { %2678 = vmatpush1.msra.mxu0 %v2660_v14 }
  0xf8   :  { %v2332_v15 = vpop.permute.xlu0 %2331  ;;  %5719 = vmatmul.mubr.msk.f32.vlgmr.msra.gmra.mrb[0].mxu0 %vm81_vm1, %v5718_v13 }
  0xf9   :  { %v2340_v16 = vsel %vm2333_vm9, %v2330_v1, %v2332_v15  ;;  %v2650_v17 = vpop.permute.xlu1 %2649  ;;  %2883 = vmatprep.mubr.f32.mxu0 %v6008_v2 }
  0xfa   :  { %5866 = vmatpush3.msra.mxu1 %v2340_v16  ;;  %v2662_v21 = vsel %vm2659_vm10, %v2648_v10, %v2650_v17 }
  0xfb   :  { %5868 = vmatmul.mubr.msk.f32.vlgmr.msra.gmra.mrb[6].mxu1 %vm81_vm1, %v5713_v61 }
  0xfc   :  { %v2652_v18 = vpop.permute.xlu0 %2651  ;;  %2812 = vmatprep.mubr.f32.mxu1 %v6008_v2 }
  0xfd   :  { %v2654_v19 = vpop.permute.xlu1 %2653  ;;  %v2663_v20 = vsel %vm2659_vm10, %v2650_v17, %v2652_v18  ;;  %v6019_v17 = vmov 0  }
  0xfe   :  { %2748 = vmatprep.subr.mxu1 %v2663_v20  ;;  %v2664_v25 = vsel %vm2659_vm10, %v2652_v18, %v2654_v19  ;;  %5999 = vset.pattern.permute.xlu0 %v6019_v17  ;;  %v2967_v18 = vld [vmem:[%s6964_s3] sm:$0xf] }
  0xff   :  { %2749 = vmatpush1.msra.mxu1 %v2662_v21  ;;  %6000 = vset.pattern.permute.xlu1 %v6019_v17 }
 0x100   :  { %v2656_v22 = vpop.permute.xlu0 %2655  ;;  %5720 = vmatmul.mubr.msk.f32.vlgmr.msra.gmra.mrb[2].mxu1 %vm81_vm1, %v5718_v13  ;;  %5870 = vmatprep.subr.mxu1 %v6008_v2 }
 0x101   :  { %v2658_v23 = vpop.permute.xlu1 %2657  ;;  %v2665_v24 = vsel %vm2659_vm10, %v2654_v19, %v2656_v22  ;;  %5872 = vmatprep.mubr.msk.f32.mxu1 %vm6018_vm3, %v6008_v2 }
 0x102   :  { %v2666_v26 = vsel %vm2659_vm10, %v2656_v22, %v2658_v23  ;;  %2819 = vmatprep.subr.mxu0 %v2665_v24 }
 0x103   :  { %5871 = vmatpush3.msra.mxu1 %v2666_v26  ;;  %2820 = vmatpush1.msra.mxu0 %v2664_v25 }
 0x104   :  { %5721 = vmatmul.mubr.msk.f32.vlgmr.msra.gmra.mrb[2].mxu0 %vm81_vm1, %v5718_v13  ;;  %5873 = vmatmul.mubr.msk.f32.vlgmr.msra.gmra.mrb[6].mxu1 %vm81_vm1, %v5718_v13 }
 0x105   :  { %3243 = vmatprep.mubr.f32.mxu0 %v6008_v2  ;;  %3314 = vmatprep.mubr.f32.mxu1 %v6008_v2 }
 0x15f   :  { %v468_v27 = vpop.f32.mrb[0].mxu1 }
 0x160   :  { %v470_v28 = vpop.f32.mrb[1].mxu1 }
 0x167   :  { %v610_v29 = vpop.f32.mrb[4].mxu1 }
 0x168   :  { %v612_v30 = vpop.f32.mrb[5].mxu1 }
 0x1cb   :  { %v2743_v37 = vpop.f32.mrb[0].mxu0 }
 0x1cc   :  { %v5875_v39 = vadd.f32 %v2743_v37, %v468_v27  ;;  %v2745_v40 = vpop.f32.mrb[1].mxu0 }
 0x1cd   :  { %v5876_v42 = vadd.f32 %v2745_v40, %v470_v28 }
 0x1ce   :  { %v3005_v44 = vmul.f32 %v5875_v39, %v6440_v36 }
 0x1cf   :  { %v3006_v45 = vmul.f32 %v5876_v42, %v6444_v38 }
 0x1d0   :  { %v3013_v48 = vsel %vm3012_vm11, %v3005_v44, 0.0 }
 0x1d1   :  { %v3014_v49 = vsel %vm3012_vm11, %v3006_v45, 0.0 }
 0x1d2   :  { %v3015_v56 = vadd.f32 %v3014_v49, %v3013_v48 }
 0x1d3   :  { %v2814_v51 = vpop.f32.mrb[2].mxu1 }
 0x1d4   :  { %v3007_v53 = vmul.f32 %v6452_v46, %v2814_v51  ;;  %v2816_v54 = vpop.f32.mrb[3].mxu1 }
 0x1d5   :  { %v3008_v57 = vmul.f32 %v6456_v47, %v2816_v54 }
 0x1d6   :  { %v3016_v58 = vsel %vm3012_vm11, %v3007_v53, 0.0 }
 0x1d7   :  { %v3017_v60 = vadd.f32 %v3016_v58, %v3015_v56  ;;  %v3018_v61 = vsel %vm3012_vm11, %v3008_v57, 0.0  ;;  %v2885_v62 = vpop.f32.mrb[2].mxu0  ;;  %v2956_v63 = vpop.f32.mrb[6].mxu1 }
 0x1d8   :  { %v5877_v1 = vadd.f32 %v2885_v62, %v610_v29  ;;  %v2887_v4 = vpop.f32.mrb[3].mxu0  ;;  %v5874_v5 = vpop.f32.mrb[7].mxu1  ;;  %v3011_v11 = vmul.f32 %v6477_v3, %v2956_v63 }
 0x1d9   :  { %v3019_v6 = vadd.f32 %v3018_v61, %v3017_v60  ;;  %v5878_v7 = vadd.f32 %v2887_v4, %v612_v30 }
 0x1da   :  { %v3009_v8 = vmul.f32 %v5877_v1, %v6468_v59  ;;  %v3024_v15 = vsel %vm3012_vm11, %v3011_v11, 0.0 }
 0x1db   :  { %v3010_v9 = vmul.f32 %v5878_v7, %v6473_v0 }
 0x1dc   :  { %v3020_v10 = vsel %vm3012_vm11, %v3009_v8, 0.0 }
 0x1dd   :  { %v3021_v12 = vadd.f32 %v3020_v10, %v3019_v6  ;;  %v3022_v13 = vsel %vm3012_vm11, %v3010_v9, 0.0 }
 0x1df   :  { %v3023_v14 = vadd.f32 %v3022_v13, %v3021_v12 }
 0x1e1   :  { %v3025_v16 = vadd.f32 %v3024_v15, %v3023_v14 }
 0x1e3   :  { %3026 = vadd.xlane.f32.xlu0 %v3025_v16 }
 0x1f9   :  { %3077 = vperm.xlu0 %5999, %v2967_v18  }
 0x270   :  { %v3027_v19 = vpop.xlane.xlu0 %3026 }
 0x271   :  { %v3028_v20 = vmul.f32 0.001953125, %v3027_v19 }
 0x273   :  { %v3029_v21 = vsub.f32 %v5875_v39, %v3028_v20  ;;  %v3030_v22 = vsub.f32 %v5876_v42, %v3028_v20  ;;  %v3031_v23 = vsub.f32 %v2814_v51, %v3028_v20  ;;  %v3032_v24 = vsub.f32 %v2816_v54, %v3028_v20 }
 0x274   :  { %v3033_v25 = vsub.f32 %v5877_v1, %v3028_v20  ;;  %v3034_v26 = vsub.f32 %v5878_v7, %v3028_v20  ;;  %v3035_v31 = vsub.f32 %v2956_v63, %v3028_v20  ;;  %v2968_v7 = vld [vmem:[%s6965_s4] sm:$0xf] }
 0x275   :  { %v3036_v27 = vmul.f32 %v3029_v21, %v6440_v36  ;;  %v3037_v28 = vmul.f32 %v3030_v22, %v6444_v38  ;;  %v3038_v29 = vmul.f32 %v3031_v23, %v6452_v46  ;;  %v3039_v30 = vmul.f32 %v3032_v24, %v6456_v47 }
 0x276   :  { %v3040_v34 = vmul.f32 %v3033_v25, %v6468_v59  ;;  %v3041_v39 = vmul.f32 %v3034_v26, %v6473_v0  ;;  %v3042_v51 = vmul.f32 %v3035_v31, %v6477_v3 }
 0x277   :  { %v3043_v37 = vmul.f32 %v3036_v27, %v3036_v27  ;;  %v3044_v40 = vmul.f32 %v3037_v28, %v3037_v28  ;;  %v3045_v44 = vmul.f32 %v3038_v29, %v3038_v29  ;;  %v3046_v42 = vmul.f32 %v3039_v30, %v3039_v30 }
 0x278   :  { %v3047_v53 = vmul.f32 %v3040_v34, %v3040_v34  ;;  %v3048_v57 = vmul.f32 %v3041_v39, %v3041_v39  ;;  %v3049_v61 = vmul.f32 %v3042_v51, %v3042_v51  ;;  %v3078_v12 = vpop.permute.xlu0 %3077 }
 0x279   :  { %v3050_v45 = vsel %vm3012_vm11, %v3043_v37, 0.0  ;;  %v3051_v48 = vsel %vm3012_vm11, %v3044_v40, 0.0  ;;  %v3053_v54 = vsel %vm3012_vm11, %v3045_v44, 0.0  ;;  %v3055_v58 = vsel %vm3012_vm11, %v3046_v42, 0.0 }
 0x27a   :  { %v3052_v49 = vadd.f32 %v3051_v48, %v3050_v45  ;;  %v3057_v62 = vsel %vm3012_vm11, %v3047_v53, 0.0  ;;  %v3059_v1 = vsel %vm3012_vm11, %v3048_v57, 0.0  ;;  %v3061_v5 = vsel %vm3012_vm11, %v3049_v61, 0.0 }
 0x27c   :  { %v3054_v56 = vadd.f32 %v3053_v54, %v3052_v49 }
 0x27e   :  { %v3056_v60 = vadd.f32 %v3055_v58, %v3054_v56 }
 0x280   :  { %v3058_v63 = vadd.f32 %v3057_v62, %v3056_v60 }
 0x282   :  { %v3060_v4 = vadd.f32 %v3059_v1, %v3058_v63 }
 0x284   :  { %v3062_v6 = vadd.f32 %v3061_v5, %v3060_v4 }
 0x286   :  { %3063 = vadd.xlane.f32.xlu1 %v3062_v6 }
 0x297   :  { %3089 = vperm.xlu1 %6000, %v2968_v7  }
 0x313   :  { %v3064_v8 = vpop.xlane.xlu1 %3063 }
 0x314   :  { %v3065_v9 = vmul.f32 0.001953125, %v3064_v8 }
 0x316   :  { %v3066_v10 = vadd.f32 1e-05, %v3065_v9 }
 0x317   :  { %v3090_v20 = vpop.permute.xlu1 %3089 }
 0x318   :  { %6001 = vrsqrt.f32 %v3066_v10 }
 0x322   :  { %v6002_v11 = vpop.eup %6001 }
 0x323   :  { %v3068_v13 = vmul.f32 %v6002_v11, %v3036_v27  ;;  %v3069_v14 = vmul.f32 %v6002_v11, %v3037_v28  ;;  %v3070_v15 = vmul.f32 %v6002_v11, %v3038_v29  ;;  %v3071_v16 = vmul.f32 %v6002_v11, %v3039_v30 }
 0x324   :  { %v3072_v17 = vmul.f32 %v6002_v11, %v3040_v34  ;;  %v3073_v18 = vmul.f32 %v6002_v11, %v3041_v39  ;;  %v3074_v19 = vmul.f32 %v6002_v11, %v3042_v51 }
 0x325   :  { %v3080_v21 = vmul.f32 %v3078_v12, %v3068_v13  ;;  %v3081_v22 = vmul.f32 %v3078_v12, %v3069_v14  ;;  %v3082_v23 = vmul.f32 %v3078_v12, %v3070_v15  ;;  %v3083_v24 = vmul.f32 %v3078_v12, %v3071_v16  ;;  %v30_v14 = vld [vmem:[%s6963_s7] sm:$0x7f] }
 0x326   :  { %v3084_v25 = vmul.f32 %v3078_v12, %v3072_v17  ;;  %v3085_v26 = vmul.f32 %v3078_v12, %v3073_v18  ;;  %v3086_v31 = vmul.f32 %v3078_v12, %v3074_v19  ;;  %v5519_v15 = vrot.slane %v30_v14, %v2976_v35 }
 0x327   :  { %v3092_v37 = vadd.f32 %v3090_v20, %v3080_v21  ;;  %v3093_v40 = vadd.f32 %v3090_v20, %v3081_v22  ;;  %v3094_v44 = vadd.f32 %v3090_v20, %v3082_v23  ;;  %v3095_v42 = vadd.f32 %v3090_v20, %v3083_v24 }
 0x328   :  { %v3096_v45 = vadd.f32 %v3090_v20, %v3084_v25  ;;  %v3097_v27 = vadd.f32 %v3090_v20, %v3085_v26  ;;  %v3098_v28 = vadd.f32 %v3090_v20, %v3086_v31  ;;  %v5527_v16 = vrot.slane %v30_v14, %v2984_v43 }
 0x329   :  { %v3099_v29 = vmax.f32 %v3092_v37, 0.0  ;;  %v3100_v30 = vmax.f32 %v3093_v40, 0.0  ;;  %v3101_v34 = vmax.f32 %v3094_v44, 0.0  ;;  %v3102_v39 = vmax.f32 %v3095_v42, 0.0 }
 0x32a   :  { %v3103_v48 = vmax.f32 %v3096_v45, 0.0  ;;  %v3104_v49 = vmax.f32 %v3097_v27, 0.0  ;;  %v3105_v51 = vmax.f32 %v3098_v28, 0.0  ;;  %v5535_v19 = vrot.slane %v30_v14, %v2992_v52 }
 0x32b   :  { %v3106_v53 = vmul.f32 %v3099_v29, %v6440_v36  ;;  %v3107_v54 = vmul.f32 %v3100_v30, %v6444_v38  ;;  %v3108_v56 = vmul.f32 %v3101_v34, %v6452_v46  ;;  %v3109_v57 = vmul.f32 %v3102_v39, %v6456_v47 }
 0x32c   :  { %v3110_v58 = vmul.f32 %v3103_v48, %v6468_v59  ;;  %v3111_v60 = vmul.f32 %v3104_v49, %v6473_v0  ;;  %v3112_v61 = vmul.f32 %v3105_v51, %v6477_v3  ;;  %v5515_v21 = vrot.slane %v30_v14, %v2972_v33  ;;  %v5723_v49 = vld [vmem:[%s6966_s2 + $0x4] sm:$0xf] }
 0x32d   :  { %v3119_v62 = vcombine.low %v3106_v53, %v3107_v54  ;;  %v6512_v63 = vcombine.low %v3108_v56, %v3109_v57  ;;  %v6005_v59 = vcombine.low %v3109_v57, %v3109_v57  ;;  %v6007_v3 = vcombine.low %v3107_v54, %v3107_v54 }
 0x32e   :  { %v6514_v1 = vcombine.low %v3110_v58, %v3111_v60  ;;  %3128 = vst [vmem:[#allocation2 + $0x18] sm:$0xf] %v3112_v61  ;;  %v6006_v0 = vcombine.low %v3111_v60, %v3111_v60  ;;  %v5523_v23 = vrot.slane %v30_v14, %v2980_v41  ;;  %v5531_v25 = vrot.slane %v30_v14, %v2988_v50 }
 0x32f   :  { %v5539_v31 = vrot.slane %v30_v14, %v2996_v55  ;;  %v5742_v14 = vld [vmem:[%s6966_s2 + $0x8] sm:$0xf] }
 0x335   :  { %v3132_v4 = vld [vmem:[#allocation2 + $0x18] sm:$0xf] }
 0x336   :  { %3404 = vrot.lane.b32.xlu1 %v3132_v4, %s6010_s22  ;;  %3155 = vrot.lane.b32.xlu0 %v3132_v4, %s6009_s9  ;;  %v3910_v36 = vld [vmem:[#allocation2 + $0x18] sm:$0xf] }
 0x337   :  { %v3643_v38 = vld [vmem:[#allocation2 + $0x18] sm:$0xf] }
 0x338   :  { %v4444_v46 = vld [vmem:[#allocation2 + $0x18] sm:$0xf] }
 0x339   :  { %v4177_v47 = vld [vmem:[#allocation2 + $0x18] sm:$0xf] }
 0x33a   :  { %3932 = vrot.lane.b32.xlu1 %v3910_v36, %s6012_s23  ;;  %3665 = vrot.lane.b32.xlu0 %v3643_v38, %s6011_s0  ;;  %v4711_v5 = vld [vmem:[#allocation2 + $0x18] sm:$0xf] }
 0x33b   :  { %v5245_v6 = vld [vmem:[#allocation2 + $0x18] sm:$0xf] }
 0x33c   :  { %v4978_v11 = vld [vmem:[#allocation2 + $0x18] sm:$0xf] }
 0x33e   :  { %4466 = vrot.lane.b32.xlu1 %v4444_v46, %s6014_s25  ;;  %4199 = vrot.lane.b32.xlu0 %v4177_v47, %s6013_s24  ;;  %v3133_v46 = vld [vmem:[%s6966_s2] sm:$0xf] }
 0x342   :  { %3396 = vrot.lane.b32.xlu0 %v6512_v63, %s6010_s22  ;;  %3147 = vrot.lane.b32.xlu1 %v6512_v63, %s6009_s9 }
 0x346   :  { %3653 = vrot.lane.b32.xlu0 %v3119_v62, %s6011_s0  ;;  %3143 = vrot.lane.b32.xlu1 %v3119_v62, %s6009_s9 }
 0x34a   :  { %3661 = vrot.lane.b32.xlu0 %v6514_v1, %s6011_s0  ;;  %3151 = vrot.lane.b32.xlu1 %v6514_v1, %s6009_s9 }
 0x34e   :  { %3924 = vrot.lane.b32.xlu0 %v6512_v63, %s6012_s23  ;;  %3392 = vrot.lane.b32.xlu1 %v3119_v62, %s6010_s22 }
 0x352   :  { %4187 = vrot.lane.b32.xlu0 %v3119_v62, %s6013_s24  ;;  %3400 = vrot.lane.b32.xlu1 %v6514_v1, %s6010_s22 }
 0x356   :  { %4195 = vrot.lane.b32.xlu0 %v6514_v1, %s6013_s24  ;;  %3657 = vrot.lane.b32.xlu1 %v6512_v63, %s6011_s0 }
 0x35a   :  { %4458 = vrot.lane.b32.xlu0 %v6512_v63, %s6014_s25  ;;  %3920 = vrot.lane.b32.xlu1 %v3119_v62, %s6012_s23 }
 0x35e   :  { %4721 = vrot.lane.b32.xlu0 %v3119_v62, %s6015_s26  ;;  %3928 = vrot.lane.b32.xlu1 %v6514_v1, %s6012_s23 }
 0x362   :  { %4729 = vrot.lane.b32.xlu0 %v6514_v1, %s6015_s26  ;;  %4191 = vrot.lane.b32.xlu1 %v6512_v63, %s6013_s24 }
 0x366   :  { %3398 = vrot.lane.b32.xlu0 %v6005_v59, %s6010_s22  ;;  %4454 = vrot.lane.b32.xlu1 %v3119_v62, %s6014_s25 }
 0x36a   :  { %3402 = vrot.lane.b32.xlu0 %v6006_v0, %s6010_s22  ;;  %4462 = vrot.lane.b32.xlu1 %v6514_v1, %s6014_s25 }
 0x36e   :  { %3655 = vrot.lane.b32.xlu0 %v6007_v3, %s6011_s0  ;;  %3145 = vrot.lane.b32.xlu1 %v6007_v3, %s6009_s9 }
 0x372   :  { %4733 = vrot.lane.b32.xlu0 %v4711_v5, %s6015_s26  ;;  %3149 = vrot.lane.b32.xlu1 %v6005_v59, %s6009_s9 }
 0x376   :  { %3926 = vrot.lane.b32.xlu0 %v6005_v59, %s6012_s23  ;;  %3153 = vrot.lane.b32.xlu1 %v6006_v0, %s6009_s9 }
 0x37a   :  { %3930 = vrot.lane.b32.xlu0 %v6006_v0, %s6012_s23  ;;  %3394 = vrot.lane.b32.xlu1 %v6007_v3, %s6010_s22 }
 0x37e   :  { %4189 = vrot.lane.b32.xlu0 %v6007_v3, %s6013_s24  ;;  %4725 = vrot.lane.b32.xlu1 %v6512_v63, %s6015_s26 }
 0x382   :  { %4992 = vrot.lane.b32.xlu0 %v6512_v63, %s6016_s27  ;;  %3659 = vrot.lane.b32.xlu1 %v6005_v59, %s6011_s0 }
 0x386   :  { %4460 = vrot.lane.b32.xlu0 %v6005_v59, %s6014_s25  ;;  %3663 = vrot.lane.b32.xlu1 %v6006_v0, %s6011_s0 }
 0x38a   :  { %4464 = vrot.lane.b32.xlu0 %v6006_v0, %s6014_s25  ;;  %3922 = vrot.lane.b32.xlu1 %v6007_v3, %s6012_s23 }
 0x38e   :  { %4723 = vrot.lane.b32.xlu0 %v6007_v3, %s6015_s26  ;;  %4988 = vrot.lane.b32.xlu1 %v3119_v62, %s6016_s27 }
 0x392   :  { %5255 = vrot.lane.b32.xlu0 %v3119_v62, %s6017_s30  ;;  %4193 = vrot.lane.b32.xlu1 %v6005_v59, %s6013_s24 }
 0x396   :  { %4994 = vrot.lane.b32.xlu0 %v6005_v59, %s6016_s27  ;;  %4197 = vrot.lane.b32.xlu1 %v6006_v0, %s6013_s24 }
 0x39a   :  { %4998 = vrot.lane.b32.xlu0 %v6006_v0, %s6016_s27  ;;  %4456 = vrot.lane.b32.xlu1 %v6007_v3, %s6014_s25 }
 0x39e   :  { %5257 = vrot.lane.b32.xlu0 %v6007_v3, %s6017_s30  ;;  %4996 = vrot.lane.b32.xlu1 %v6514_v1, %s6016_s27 }
 0x3a2   :  { %5263 = vrot.lane.b32.xlu0 %v6514_v1, %s6017_s30  ;;  %4727 = vrot.lane.b32.xlu1 %v6005_v59, %s6015_s26 }
 0x3a6   :  { %5267 = vrot.lane.b32.xlu0 %v5245_v6, %s6017_s30  ;;  %4731 = vrot.lane.b32.xlu1 %v6006_v0, %s6015_s26 }
 0x3a8   :  { %v6591_v7 = vpop.permute.xlu1 %3404  ;;  %v6593_v8 = vpop.permute.xlu0 %3155 }
 0x3aa   :  { %4990 = vrot.lane.b32.xlu1 %v6007_v3, %s6016_s27  ;;  %5542 = vrot.lane.b32.xlu0 %v5519_v15, %s6013_s24 }
 0x3ac   :  { %v6596_v9 = vpop.permute.xlu1 %3932  ;;  %v6598_v10 = vpop.permute.xlu0 %3665 }
 0x3ae   :  { %5000 = vrot.lane.b32.xlu1 %v4978_v11, %s6016_s27  ;;  %5546 = vrot.lane.b32.xlu0 %v5527_v16, %s6013_s24 }
 0x3b0   :  { %v6601_v12 = vpop.permute.xlu1 %4466  ;;  %v6603_v13 = vpop.permute.xlu0 %4199 }
 0x3b2   :  { %5259 = vrot.lane.b32.xlu1 %v6512_v63, %s6017_s30  ;;  %5550 = vrot.lane.b32.xlu0 %v5535_v19, %s6013_s24 }
 0x3b4   :  { %v6615_v17 = vpop.permute.xlu0 %3396  ;;  %v3148_v18 = vpop.permute.xlu1 %3147 }
 0x3b6   :  { %5261 = vrot.lane.b32.xlu1 %v6005_v59, %s6017_s30 }
 0x3b8   :  { %v6621_v20 = vpop.permute.xlu0 %3653  ;;  %v3144_v35 = vpop.permute.xlu1 %3143 }
 0x3ba   :  { %5265 = vrot.lane.b32.xlu1 %v6006_v0, %s6017_s30 }
 0x3bc   :  { %v6627_v43 = vpop.permute.xlu0 %3661  ;;  %v3152_v22 = vpop.permute.xlu1 %3151 }
 0x3be   :  { %5540 = vrot.lane.b32.xlu1 %v5515_v21, %s6013_s24 }
 0x3c0   :  { %v6632_v24 = vpop.permute.xlu0 %3924  ;;  %v3393_v52 = vpop.permute.xlu1 %3392 }
 0x3c2   :  { %5544 = vrot.lane.b32.xlu1 %v5523_v23, %s6013_s24 }
 0x3c4   :  { %v6637_v26 = vpop.permute.xlu0 %4187  ;;  %v3401_v33 = vpop.permute.xlu1 %3400 }
 0x3c6   :  { %5548 = vrot.lane.b32.xlu1 %v5531_v25, %s6013_s24 }
 0x3c8   :  { %v6642_v37 = vpop.permute.xlu0 %4195  ;;  %v6644_v40 = vpop.permute.xlu1 %3657 }
 0x3ca   :  { %5552 = vrot.lane.b32.xlu1 %v5539_v31, %s6013_s24 }
 0x3cc   :  { %v6647_v41 = vpop.permute.xlu0 %4458  ;;  %v6649_v44 = vpop.permute.xlu1 %3920 }
 0x3d0   :  { %v6651_v42 = vpop.permute.xlu0 %4721  ;;  %v6653_v50 = vpop.permute.xlu1 %3928 }
 0x3d4   :  { %v6655_v45 = vpop.permute.xlu0 %4729  ;;  %v6657_v27 = vpop.permute.xlu1 %4191 }
 0x3d8   :  { %v3399_v32 = vpop.permute.xlu0 %3398  ;;  %v6659_v55 = vpop.permute.xlu1 %4454 }
 0x3d9   :  { %v3409_v57 = vsel %vm384_vm2, %v3399_v32, %v3401_v33  ;;  %v3408_v58 = vsel %vm384_vm2, %v6615_v17, %v3399_v32 }
 0x3dc   :  { %v3403_v28 = vpop.permute.xlu0 %3402  ;;  %v6661_v29 = vpop.permute.xlu1 %4462 }
 0x3dd   :  { %v3411_v47 = vsel %vm384_vm2, %v3403_v28, %v6591_v7  ;;  %v3410_v59 = vsel %vm384_vm2, %v3401_v33, %v3403_v28 }
 0x3e0   :  { %v3656_v30 = vpop.permute.xlu0 %3655  ;;  %v3146_v34 = vpop.permute.xlu1 %3145 }
 0x3e1   :  { %v3157_v39 = vsel %vm66_vm0, %v3144_v35, %v3146_v34  ;;  %v3158_v48 = vsel %vm66_vm0, %v3146_v34, %v3148_v18  ;;  %v3668_v5 = vsel %vm703_vm4, %v3656_v30, %v6644_v40  ;;  %v3667_v6 = vsel %vm703_vm4, %v6621_v20, %v3656_v30 }
 0x3e2   :  { %5724 = vmatprep.subr.msk.mxu0 %vm3012_vm11, %v3158_v48  ;;  %v5772_v48 = vld [vmem:[%s6966_s2 + $0x14] sm:$0xf] }
 0x3e3   :  { %5725 = vmatpush1.msk.msra.mxu0 %vm3012_vm11, %v3157_v39 }
 0x3e4   :  { %v6670_v51 = vpop.permute.xlu0 %4733  ;;  %v3150_v53 = vpop.permute.xlu1 %3149  ;;  %5726 = vmatmul.mubr.msk.f32.vlgmr.msra.gmra.mrb[4].mxu0 %vm3163_vm12, %v5723_v49 }
 0x3e5   :  { %v3159_v54 = vsel %vm66_vm0, %v3148_v18, %v3150_v53  ;;  %v3160_v56 = vsel %vm66_vm0, %v3150_v53, %v3152_v22  ;;  %3385 = vmatprep.mubr.f32.mxu0 %v6008_v2 }
 0x3e6   :  { %5727 = vmatprep.subr.msk.mxu1 %vm3012_vm11, %v3160_v56 }
 0x3e7   :  { %5728 = vmatpush1.msk.msra.mxu1 %vm3012_vm11, %v3159_v54 }
 0x3e8   :  { %v3927_v60 = vpop.permute.xlu0 %3926  ;;  %5736 = vmatprep.subr.msk.mxu1 %vm3012_vm11, %v3409_v57  ;;  %v3154_v61 = vpop.permute.xlu1 %3153  ;;  %5729 = vmatmul.mubr.msk.f32.vlgmr.msra.gmra.mrb[8].mxu1 %vm3163_vm12, %v5723_v49 }
 0x3e9   :  { %v3161_v62 = vsel %vm66_vm0, %v3152_v22, %v3154_v61  ;;  %v3162_v63 = vsel %vm66_vm0, %v3154_v61, %v6593_v8  ;;  %5737 = vmatpush1.msk.msra.mxu1 %vm3012_vm11, %v3408_v58  ;;  %3562 = vmatprep.mubr.f32.mxu1 %v6008_v2  ;;  %v3937_v16 = vsel %vm1029_vm5, %v3927_v60, %v6653_v50  ;;  %v5752_v22 = vld [vmem:[%s6966_s2 + $0xc] sm:$0xf] }
 0x3ea   :  { %5730 = vmatprep.subr.msk.mxu0 %vm3012_vm11, %v3162_v63  ;;  %v3936_v18 = vsel %vm1029_vm5, %v6632_v24, %v3927_v60  ;;  %v5782_v60 = vld [vmem:[%s6966_s2 + $0x18] sm:$0xf] }
 0x3eb   :  { %5731 = vmatpush1.msk.msra.mxu0 %vm3012_vm11, %v3161_v62 }
 0x3ec   :  { %v3931_v1 = vpop.permute.xlu0 %3930  ;;  %5732 = vmatmul.mubr.msk.f32.vlgmr.msra.gmra.mrb[6].mxu0 %vm3163_vm12, %v5723_v49  ;;  %v3395_v4 = vpop.permute.xlu1 %3394 }
 0x3ed   :  { %v3406_v36 = vsel %vm384_vm2, %v3393_v52, %v3395_v4  ;;  %v3407_v38 = vsel %vm384_vm2, %v3395_v4, %v6615_v17  ;;  %3491 = vmatprep.mubr.f32.mxu0 %v6008_v2  ;;  %v3939_v23 = vsel %vm1029_vm5, %v3931_v1, %v6596_v9  ;;  %v3938_v52 = vsel %vm1029_vm5, %v6653_v50, %v3931_v1  ;;  %v5762_v50 = vld [vmem:[%s6966_s2 + $0x10] sm:$0xf] }
 0x3ee   :  { %5733 = vmatprep.subr.msk.mxu0 %vm3012_vm11, %v3407_v38  ;;  %v5792_v38 = vld [vmem:[%s6966_s2 + $0x1c] sm:$0xf] }
 0x3ef   :  { %5734 = vmatpush1.msk.msra.mxu0 %vm3012_vm11, %v3406_v36 }
 0x3f0   :  { %v4190_v0 = vpop.permute.xlu0 %4189  ;;  %5735 = vmatmul.mubr.msk.f32.vlgmr.msra.gmra.mrb[4].mxu0 %vm3163_vm12, %v3133_v46  ;;  %5739 = vmatprep.subr.msk.mxu0 %vm3012_vm11, %v3411_v47  ;;  %v6705_v3 = vpop.permute.xlu1 %4725 }
 0x3f1   :  { %5738 = vmatmul.mubr.msk.f32.vlgmr.msra.gmra.mrb[8].mxu1 %vm3163_vm12, %v3133_v46  ;;  %5740 = vmatpush1.msk.msra.mxu0 %vm3012_vm11, %v3410_v59  ;;  %v4202_v25 = vsel %vm1355_vm6, %v4190_v0, %v6657_v27  ;;  %v4201_v9 = vsel %vm1355_vm6, %v6637_v26, %v4190_v0 }
 0x3f2   :  { %5743 = vmatprep.subr.msk.mxu0 %vm3012_vm11, %v3668_v5  ;;  %3633 = vmatprep.mubr.f32.mxu0 %v6008_v2 }
 0x3f3   :  { %3823 = vmatprep.mubr.f32.mxu1 %v6008_v2 }
 0x3f4   :  { %5741 = vmatmul.mubr.msk.f32.vlgmr.msra.gmra.mrb[6].mxu0 %vm3163_vm12, %v3133_v46  ;;  %v3660_v7 = vpop.permute.xlu1 %3659  ;;  %v6726_v15 = vpop.permute.xlu0 %4992 }
 0x3f5   :  { %5744 = vmatpush1.msk.msra.mxu0 %vm3012_vm11, %v3667_v6  ;;  %v3669_v8 = vsel %vm703_vm4, %v6644_v40, %v3660_v7  ;;  %v3670_v11 = vsel %vm703_vm4, %v3660_v7, %v6627_v43  ;;  %3752 = vmatprep.mubr.f32.mxu0 %v6008_v2  ;;  %v5802_v6 = vld [vmem:[%s6966_s2 + $0x20] sm:$0xf] }
 0x3f6   :  { %5746 = vmatprep.subr.msk.mxu1 %vm3012_vm11, %v3670_v11 }
 0x3f7   :  { %5747 = vmatpush1.msk.msra.mxu1 %vm3012_vm11, %v3669_v8 }
 0x3f8   :  { %5745 = vmatmul.mubr.msk.f32.vlgmr.msra.gmra.mrb[4].mxu0 %vm3163_vm12, %v5742_v14  ;;  %5756 = vmatprep.subr.msk.mxu1 %vm3012_vm11, %v3937_v16  ;;  %v3664_v17 = vpop.permute.xlu1 %3663  ;;  %v4461_v35 = vpop.permute.xlu0 %4460 }
 0x3f9   :  { %v3671_v19 = vsel %vm703_vm4, %v6627_v43, %v3664_v17  ;;  %v3672_v20 = vsel %vm703_vm4, %v3664_v17, %v6598_v10  ;;  %5748 = vmatmul.mubr.msk.f32.vlgmr.msra.gmra.mrb[8].mxu1 %vm3163_vm12, %v5742_v14  ;;  %3894 = vmatprep.mubr.f32.mxu0 %v6008_v2  ;;  %v4471_v26 = vsel %vm1681_vm7, %v4461_v35, %v6661_v29 }
 0x3fa   :  { %5757 = vmatpush1.msk.msra.mxu1 %vm3012_vm11, %v3936_v18  ;;  %5749 = vmatprep.subr.msk.mxu0 %vm3012_vm11, %v3672_v20  ;;  %v4470_v28 = vsel %vm1681_vm7, %v6647_v41, %v4461_v35 }
 0x3fb   :  { %5750 = vmatpush1.msk.msra.mxu0 %vm3012_vm11, %v3671_v19  ;;  %4090 = vmatprep.mubr.f32.mxu1 %v6008_v2 }
 0x3fc   :  { %5751 = vmatmul.mubr.msk.f32.vlgmr.msra.gmra.mrb[6].mxu0 %vm3163_vm12, %v5742_v14  ;;  %v3923_v21 = vpop.permute.xlu1 %3922  ;;  %v4465_v33 = vpop.permute.xlu0 %4464 }
 0x3fd   :  { %v3934_v43 = vsel %vm1029_vm5, %v6649_v44, %v3923_v21  ;;  %v3935_v10 = vsel %vm1029_vm5, %v3923_v21, %v6632_v24  ;;  %4019 = vmatprep.mubr.f32.mxu0 %v6008_v2  ;;  %v4473_v53 = vsel %vm1681_vm7, %v4465_v33, %v6601_v12 }
 0x3fe   :  { %5753 = vmatprep.subr.msk.mxu0 %vm3012_vm11, %v3935_v10 }
 0x3ff   :  { %5754 = vmatpush1.msk.msra.mxu0 %vm3012_vm11, %v3934_v43 }
 0x400   :  { %5755 = vmatmul.mubr.msk.f32.vlgmr.msra.gmra.mrb[4].mxu0 %vm3163_vm12, %v5752_v22  ;;  %5759 = vmatprep.subr.msk.mxu0 %vm3012_vm11, %v3939_v23  ;;  %v6763_v24 = vpop.permute.xlu1 %4988  ;;  %v4724_v32 = vpop.permute.xlu0 %4723 }
 0x401   :  { %5758 = vmatmul.mubr.msk.f32.vlgmr.msra.gmra.mrb[8].mxu1 %vm3163_vm12, %v5752_v22  ;;  %5760 = vmatpush1.msk.msra.mxu0 %vm3012_vm11, %v3938_v52  ;;  %v4736_v54 = vsel %vm2007_vm8, %v4724_v32, %v6705_v3  ;;  %v4735_v12 = vsel %vm2007_vm8, %v6651_v42, %v4724_v32 }
 0x402   :  { %5763 = vmatprep.subr.msk.mxu0 %vm3012_vm11, %v4202_v25  ;;  %4161 = vmatprep.mubr.f32.mxu0 %v6008_v2 }
 0x403   :  { %4357 = vmatprep.mubr.f32.mxu1 %v6008_v2 }
 0x404   :  { %5761 = vmatmul.mubr.msk.f32.vlgmr.msra.gmra.mrb[6].mxu0 %vm3163_vm12, %v5752_v22  ;;  %v4194_v31 = vpop.permute.xlu1 %4193  ;;  %v6811_v49 = vpop.permute.xlu0 %5255 }
 0x405   :  { %5764 = vmatpush1.msk.msra.mxu0 %vm3012_vm11, %v4201_v9  ;;  %v4203_v40 = vsel %vm1355_vm6, %v6657_v27, %v4194_v31  ;;  %v4204_v44 = vsel %vm1355_vm6, %v4194_v31, %v6642_v37  ;;  %4286 = vmatprep.mubr.f32.mxu0 %v6008_v2 }
 0x406   :  { %5766 = vmatprep.subr.msk.mxu1 %vm3012_vm11, %v4204_v44 }
 0x407   :  { %5767 = vmatpush1.msk.msra.mxu1 %vm3012_vm11, %v4203_v40 }
 0x408   :  { %5765 = vmatmul.mubr.msk.f32.vlgmr.msra.gmra.mrb[4].mxu0 %vm3163_vm12, %v5762_v50  ;;  %5776 = vmatprep.subr.msk.mxu1 %vm3012_vm11, %v4471_v26  ;;  %v4198_v27 = vpop.permute.xlu1 %4197 }
 0x409   :  { %v4205_v30 = vsel %vm1355_vm6, %v6642_v37, %v4198_v27  ;;  %v4206_v34 = vsel %vm1355_vm6, %v4198_v27, %v6603_v13  ;;  %5768 = vmatmul.mubr.msk.f32.vlgmr.msra.gmra.mrb[8].mxu1 %vm3163_vm12, %v5762_v50  ;;  %4428 = vmatprep.mubr.f32.mxu0 %v6008_v2 }
 0x40a   :  { %5777 = vmatpush1.msk.msra.mxu1 %vm3012_vm11, %v4470_v28  ;;  %5769 = vmatprep.subr.msk.mxu0 %vm3012_vm11, %v4206_v34 }
 0x40b   :  { %5770 = vmatpush1.msk.msra.mxu0 %vm3012_vm11, %v4205_v30  ;;  %4624 = vmatprep.mubr.f32.mxu1 %v6008_v2 }
 0x40c   :  { %5771 = vmatmul.mubr.msk.f32.vlgmr.msra.gmra.mrb[6].mxu0 %vm3163_vm12, %v5762_v50  ;;  %v4457_v39 = vpop.permute.xlu1 %4456 }
 0x40d   :  { %v4468_v37 = vsel %vm1681_vm7, %v6659_v55, %v4457_v39  ;;  %v4469_v13 = vsel %vm1681_vm7, %v4457_v39, %v6647_v41  ;;  %4553 = vmatprep.mubr.f32.mxu0 %v6008_v2  ;;  %v4472_v55 = vsel %vm1681_vm7, %v6661_v29, %v4465_v33  ;;  %v4995_v29 = vpop.permute.xlu0 %4994 }
 0x40e   :  { %5773 = vmatprep.subr.msk.mxu0 %vm3012_vm11, %v4469_v13  ;;  %v5004_v62 = vsel %vm2333_vm9, %v6726_v15, %v4995_v29 }
 0x40f   :  { %5774 = vmatpush1.msk.msra.mxu0 %vm3012_vm11, %v4468_v37 }
 0x410   :  { %5775 = vmatmul.mubr.msk.f32.vlgmr.msra.gmra.mrb[4].mxu0 %vm3163_vm12, %v5772_v48  ;;  %5779 = vmatprep.subr.msk.mxu0 %vm3012_vm11, %v4473_v53  ;;  %v4997_v41 = vpop.permute.xlu1 %4996 }
 0x411   :  { %5778 = vmatmul.mubr.msk.f32.vlgmr.msra.gmra.mrb[8].mxu1 %vm3163_vm12, %v5772_v48  ;;  %5780 = vmatpush1.msk.msra.mxu0 %vm3012_vm11, %v4472_v55  ;;  %v5005_v42 = vsel %vm2333_vm9, %v4995_v29, %v4997_v41  ;;  %v4999_v4 = vpop.permute.xlu0 %4998 }
 0x412   :  { %5783 = vmatprep.subr.msk.mxu0 %vm3012_vm11, %v4736_v54  ;;  %4695 = vmatprep.mubr.f32.mxu0 %v6008_v2  ;;  %v5006_v0 = vsel %vm2333_vm9, %v4997_v41, %v4999_v4 }
 0x413   :  { %4891 = vmatprep.mubr.f32.mxu1 %v6008_v2 }
 0x414   :  { %5781 = vmatmul.mubr.msk.f32.vlgmr.msra.gmra.mrb[6].mxu0 %vm3163_vm12, %v5772_v48  ;;  %v4728_v56 = vpop.permute.xlu1 %4727 }
 0x415   :  { %5784 = vmatpush1.msk.msra.mxu0 %vm3012_vm11, %v4735_v12  ;;  %v4737_v57 = vsel %vm2007_vm8, %v6705_v3, %v4728_v56  ;;  %v4738_v58 = vsel %vm2007_vm8, %v4728_v56, %v6655_v45  ;;  %4820 = vmatprep.mubr.f32.mxu0 %v6008_v2  ;;  %v5258_v46 = vpop.permute.xlu0 %5257 }
 0x416   :  { %5786 = vmatprep.subr.msk.mxu1 %vm3012_vm11, %v4738_v58  ;;  %v5269_v7 = vsel %vm2659_vm10, %v6811_v49, %v5258_v46  ;;  %v5509_v58 = vld [vmem:[%s6967_s5] sm:$0xf] }
 0x417   :  { %5787 = vmatpush1.msk.msra.mxu1 %vm3012_vm11, %v4737_v57 }
 0x418   :  { %5785 = vmatmul.mubr.msk.f32.vlgmr.msra.gmra.mrb[4].mxu0 %vm3163_vm12, %v5782_v60  ;;  %5796 = vmatprep.subr.msk.mxu1 %vm3012_vm11, %v5005_v42  ;;  %v4732_v61 = vpop.permute.xlu1 %4731 }
 0x419   :  { %v4739_v63 = vsel %vm2007_vm8, %v6655_v45, %v4732_v61  ;;  %v4740_v1 = vsel %vm2007_vm8, %v4732_v61, %v6670_v51  ;;  %5788 = vmatmul.mubr.msk.f32.vlgmr.msra.gmra.mrb[8].mxu1 %vm3163_vm12, %v5782_v60  ;;  %4962 = vmatprep.mubr.f32.mxu0 %v6008_v2  ;;  %v5264_v8 = vpop.permute.xlu0 %5263 }
 0x41a   :  { %5797 = vmatpush1.msk.msra.mxu1 %vm3012_vm11, %v5004_v62  ;;  %5789 = vmatprep.subr.msk.mxu0 %vm3012_vm11, %v4740_v1 }
 0x41b   :  { %5790 = vmatpush1.msk.msra.mxu0 %vm3012_vm11, %v4739_v63  ;;  %5158 = vmatprep.mubr.f32.mxu1 %v6008_v2 }
 0x41c   :  { %5791 = vmatmul.mubr.msk.f32.vlgmr.msra.gmra.mrb[6].mxu0 %vm3163_vm12, %v5782_v60  ;;  %v4991_v36 = vpop.permute.xlu1 %4990 }
 0x41d   :  { %v5002_v45 = vsel %vm2333_vm9, %v6763_v24, %v4991_v36  ;;  %v5003_v51 = vsel %vm2333_vm9, %v4991_v36, %v6726_v15  ;;  %5087 = vmatprep.mubr.f32.mxu0 %v6008_v2  ;;  %v5268_v16 = vpop.permute.xlu0 %5267 }
 0x41e   :  { %5793 = vmatprep.subr.msk.mxu0 %vm3012_vm11, %v5003_v51 }
 0x41f   :  { %5794 = vmatpush1.msk.msra.mxu0 %vm3012_vm11, %v5002_v45 }
 0x420   :  { %5795 = vmatmul.mubr.msk.f32.vlgmr.msra.gmra.mrb[4].mxu0 %vm3163_vm12, %v5792_v38  ;;  %v5001_v47 = vpop.permute.xlu1 %5000 }
 0x421   :  { %v5007_v59 = vsel %vm2333_vm9, %v4999_v4, %v5001_v47  ;;  %5229 = vmatprep.mubr.f32.mxu0 %v6008_v2  ;;  %5798 = vmatmul.mubr.msk.f32.vlgmr.msra.gmra.mrb[8].mxu1 %vm3163_vm12, %v5792_v38  ;;  %v5543_v35 = vpop.permute.xlu0 %5542 }
 0x422   :  { %5799 = vmatprep.subr.msk.mxu0 %vm3012_vm11, %v5007_v59  ;;  %5425 = vmatprep.mubr.f32.mxu1 %v6008_v2 }
 0x423   :  { %5800 = vmatpush1.msk.msra.mxu0 %vm3012_vm11, %v5006_v0 }
 0x424   :  { %5801 = vmatmul.mubr.msk.f32.vlgmr.msra.gmra.mrb[6].mxu0 %vm3163_vm12, %v5792_v38  ;;  %v5260_v3 = vpop.permute.xlu1 %5259 }
 0x425   :  { %v5270_v5 = vsel %vm2659_vm10, %v5258_v46, %v5260_v3  ;;  %5354 = vmatprep.mubr.f32.mxu0 %v6008_v2  ;;  %v5547_v10 = vpop.permute.xlu0 %5546 }
 0x426   :  { %5803 = vmatprep.subr.msk.mxu0 %vm3012_vm11, %v5270_v5 }
 0x427   :  { %5804 = vmatpush1.msk.msra.mxu0 %vm3012_vm11, %v5269_v7 }
 0x428   :  { %5805 = vmatmul.mubr.msk.f32.vlgmr.msra.gmra.mrb[4].mxu0 %vm3163_vm12, %v5802_v6  ;;  %v5262_v11 = vpop.permute.xlu1 %5261 }
 0x429   :  { %v5271_v14 = vsel %vm2659_vm10, %v5260_v3, %v5262_v11  ;;  %v5272_v15 = vsel %vm2659_vm10, %v5262_v11, %v5264_v8  ;;  %5496 = vmatprep.mubr.f32.mxu0 %v6008_v2  ;;  %v5551_v28 = vpop.permute.xlu0 %5550 }
 0x42a   :  { %5806 = vmatprep.subr.msk.mxu1 %vm3012_vm11, %v5272_v15 }
 0x42b   :  { %5807 = vmatpush1.msk.msra.mxu1 %vm3012_vm11, %v5271_v14 }
 0x42c   :  { %5808 = vmatmul.mubr.msk.f32.vlgmr.msra.gmra.mrb[8].mxu1 %vm3163_vm12, %v5802_v6  ;;  %v5266_v17 = vpop.permute.xlu1 %5265 }
 0x42d   :  { %v5273_v18 = vsel %vm2659_vm10, %v5264_v8, %v5266_v17  ;;  %v5274_v19 = vsel %vm2659_vm10, %v5266_v17, %v5268_v16 }
 0x42e   :  { %5809 = vmatprep.subr.msk.mxu0 %vm3012_vm11, %v5274_v19 }
 0x42f   :  { %5810 = vmatpush1.msk.msra.mxu0 %vm3012_vm11, %v5273_v18 }
 0x430   :  { %5811 = vmatmul.mubr.msk.f32.vlgmr.msra.gmra.mrb[6].mxu0 %vm3163_vm12, %v5802_v6  ;;  %v5541_v20 = vpop.permute.xlu1 %5540 }
 0x431   :  { %v6902_v22 = vsel %vm1355_vm6, %v5541_v20, %v5543_v35 }
 0x434   :  { %v5545_v2 = vpop.permute.xlu1 %5544 }
 0x435   :  { %v6899_v43 = vsel %vm1355_vm6, %v5543_v35, %v5545_v2  ;;  %v6912_v40 = vsel %vm1355_vm6, %v5545_v2, %v5547_v10 }
 0x438   :  { %v5549_v21 = vpop.permute.xlu1 %5548 }
 0x439   :  { %v6908_v9 = vsel %vm1355_vm6, %v5547_v10, %v5549_v21  ;;  %v6922_v48 = vsel %vm1355_vm6, %v5549_v21, %v5551_v28  ;;  %v5510_v10 = vld [vmem:[%s6968_s6] sm:$0xf] }
 0x43c   :  { %v5553_v50 = vpop.permute.xlu1 %5552 }
 0x43d   :  { %v6918_v39 = vsel %vm1355_vm6, %v5551_v28, %v5553_v50 }
 0x4fb   :  { %v5356_v23 = vpop.f32.mrb[4].mxu0 }
 0x4fc   :  { %v5566_v52 = vmul.f32 %v6902_v22, %v5356_v23  ;;  %v5358_v24 = vpop.f32.mrb[5].mxu0 }
 0x4fd   :  { %v5567_v25 = vmul.f32 %v6899_v43, %v5358_v24 }
 0x4fe   :  { %v5572_v33 = vsel %vm3012_vm11, %v5566_v52, 0.0 }
 0x4ff   :  { %v5573_v31 = vsel %vm3012_vm11, %v5567_v25, 0.0  ;;  %v5427_v44 = vpop.f32.mrb[8].mxu1 }
 0x500   :  { %v5574_v26 = vadd.f32 %v5573_v31, %v5572_v33  ;;  %v5568_v32 = vmul.f32 %v6912_v40, %v5427_v44  ;;  %v5429_v27 = vpop.f32.mrb[9].mxu1 }
 0x501   :  { %v5569_v30 = vmul.f32 %v6908_v9, %v5429_v27 }
 0x502   :  { %v5575_v34 = vsel %vm3012_vm11, %v5568_v32, 0.0 }
 0x503   :  { %v5576_v37 = vadd.f32 %v5575_v34, %v5574_v26  ;;  %v5577_v13 = vsel %vm3012_vm11, %v5569_v30, 0.0  ;;  %v5498_v49 = vpop.f32.mrb[6].mxu0 }
 0x504   :  { %v5570_v53 = vmul.f32 %v6922_v48, %v5498_v49  ;;  %v5500_v55 = vpop.f32.mrb[7].mxu0 }
 0x505   :  { %v5578_v41 = vadd.f32 %v5577_v13, %v5576_v37  ;;  %v5571_v54 = vmul.f32 %v6918_v39, %v5500_v55 }
 0x506   :  { %v5579_v12 = vsel %vm3012_vm11, %v5570_v53, 0.0 }
 0x507   :  { %v5580_v29 = vadd.f32 %v5579_v12, %v5578_v41  ;;  %v5581_v56 = vsel %vm3012_vm11, %v5571_v54, 0.0 }
 0x509   :  { %v5582_v57 = vadd.f32 %v5581_v56, %v5580_v29 }
 0x50b   :  { %5583 = vadd.xlane.f32.xlu0 %v5582_v57 }
 0x521   :  { %5628 = vperm.xlu0 %5999, %v5509_v58  }
 0x598   :  { %v5584_v60 = vpop.xlane.xlu0 %5583 }
 0x599   :  { %v5585_v42 = vmul.f32 0.001953125, %v5584_v60 }
 0x59b   :  { %v5586_v61 = vsub.f32 %v5356_v23, %v5585_v42  ;;  %v5587_v62 = vsub.f32 %v5358_v24, %v5585_v42  ;;  %v5588_v63 = vsub.f32 %v5427_v44, %v5585_v42  ;;  %v5589_v1 = vsub.f32 %v5429_v27, %v5585_v42 }
 0x59c   :  { %v5590_v4 = vsub.f32 %v5498_v49, %v5585_v42  ;;  %v5591_v36 = vsub.f32 %v5500_v55, %v5585_v42 }
 0x59d   :  { %v5592_v45 = vmul.f32 %v5586_v61, %v6902_v22  ;;  %v5593_v51 = vmul.f32 %v5587_v62, %v6899_v43  ;;  %v5594_v38 = vmul.f32 %v5588_v63, %v6912_v40  ;;  %v5595_v46 = vmul.f32 %v5589_v1, %v6908_v9 }
 0x59e   :  { %v5596_v47 = vmul.f32 %v5590_v4, %v6922_v48  ;;  %v5597_v5 = vmul.f32 %v5591_v36, %v6918_v39 }
 0x59f   :  { %v5598_v59 = vmul.f32 %v5592_v45, %v5592_v45  ;;  %v5599_v0 = vmul.f32 %v5593_v51, %v5593_v51  ;;  %v5600_v3 = vmul.f32 %v5594_v38, %v5594_v38  ;;  %v5601_v6 = vmul.f32 %v5595_v46, %v5595_v46 }
 0x5a0   :  { %v5602_v14 = vmul.f32 %v5596_v47, %v5596_v47  ;;  %v5603_v17 = vmul.f32 %v5597_v5, %v5597_v5  ;;  %v5629_v26 = vpop.permute.xlu0 %5628 }
 0x5a1   :  { %v5604_v7 = vsel %vm3012_vm11, %v5598_v59, 0.0  ;;  %v5605_v8 = vsel %vm3012_vm11, %v5599_v0, 0.0  ;;  %v5607_v15 = vsel %vm3012_vm11, %v5600_v3, 0.0  ;;  %v5609_v18 = vsel %vm3012_vm11, %v5601_v6, 0.0 }
 0x5a2   :  { %v5606_v11 = vadd.f32 %v5605_v8, %v5604_v7  ;;  %v5611_v20 = vsel %vm3012_vm11, %v5602_v14, 0.0  ;;  %v5613_v35 = vsel %vm3012_vm11, %v5603_v17, 0.0 }
 0x5a4   :  { %v5608_v16 = vadd.f32 %v5607_v15, %v5606_v11 }
 0x5a6   :  { %v5610_v19 = vadd.f32 %v5609_v18, %v5608_v16 }
 0x5a8   :  { %v5612_v2 = vadd.f32 %v5611_v20, %v5610_v19 }
 0x5aa   :  { %v5614_v21 = vadd.f32 %v5613_v35, %v5612_v2 }
 0x5ac   :  { %5615 = vadd.xlane.f32.xlu1 %v5614_v21 }
 0x5bd   :  { %5639 = vperm.xlu1 %6000, %v5510_v10  }
 0x639   :  { %v5616_v23 = vpop.xlane.xlu1 %5615 }
 0x63a   :  { %v5617_v52 = vmul.f32 0.001953125, %v5616_v23 }
 0x63c   :  { %v5618_v24 = vadd.f32 1e-05, %v5617_v52 }
 0x63d   :  { %v5640_v13 = vpop.permute.xlu1 %5639 }
 0x63e   :  { %6003 = vrsqrt.f32 %v5618_v24 }
 0x648   :  { %v6004_v25 = vpop.eup %6003 }
 0x649   :  { %v5620_v33 = vmul.f32 %v6004_v25, %v5592_v45  ;;  %v5621_v31 = vmul.f32 %v6004_v25, %v5593_v51  ;;  %v5622_v44 = vmul.f32 %v6004_v25, %v5594_v38  ;;  %v5623_v50 = vmul.f32 %v6004_v25, %v5595_v46 }
 0x64a   :  { %v5624_v32 = vmul.f32 %v6004_v25, %v5596_v47  ;;  %v5625_v27 = vmul.f32 %v6004_v25, %v5597_v5 }
 0x64b   :  { %v5631_v28 = vmul.f32 %v5629_v26, %v5620_v33  ;;  %v5632_v30 = vmul.f32 %v5629_v26, %v5621_v31  ;;  %v5633_v34 = vmul.f32 %v5629_v26, %v5622_v44  ;;  %v5634_v37 = vmul.f32 %v5629_v26, %v5623_v50 }
 0x64c   :  { %v5635_v49 = vmul.f32 %v5629_v26, %v5624_v32  ;;  %v5636_v53 = vmul.f32 %v5629_v26, %v5625_v27 }
 0x64d   :  { %v5642_v55 = vadd.f32 %v5640_v13, %v5631_v28  ;;  %v5643_v41 = vadd.f32 %v5640_v13, %v5632_v30  ;;  %v5644_v54 = vadd.f32 %v5640_v13, %v5633_v34  ;;  %v5645_v12 = vadd.f32 %v5640_v13, %v5634_v37 }
 0x64e   :  { %v5646_v29 = vadd.f32 %v5640_v13, %v5635_v49  ;;  %v5647_v56 = vadd.f32 %v5640_v13, %v5636_v53 }
 0x64f   :  { %v5648_v57 = vmax.f32 %v5642_v55, 0.0  ;;  %v5649_v58 = vmax.f32 %v5643_v41, 0.0  ;;  %v5650_v60 = vmax.f32 %v5644_v54, 0.0  ;;  %v5651_v42 = vmax.f32 %v5645_v12, 0.0 }
 0x650   :  { %v5652_v61 = vmax.f32 %v5646_v29, 0.0  ;;  %v5653_v62 = vmax.f32 %v5647_v56, 0.0 }
 0x651   :  { %v5654_v63 = vmul.f32 %v5648_v57, %v6902_v22  ;;  %v5655_v1 = vmul.f32 %v5649_v58, %v6899_v43  ;;  %v5656_v4 = vmul.f32 %v5650_v60, %v6912_v40  ;;  %v5657_v36 = vmul.f32 %v5651_v42, %v6908_v9 }
 0x652   :  { %v5658_v45 = vmul.f32 %v5652_v61, %v6922_v48  ;;  %v5659_v51 = vmul.f32 %v5653_v62, %v6918_v39 }
 0x653   :  { %v5666_v38 = vcombine.low %v5654_v63, %v5655_v1  ;;  %v5667_v46 = vcombine.low %v5656_v4, %v5657_v36 }
 0x654   :  { %v5668_v47 = vcombine.low %v5658_v45, %v5659_v51 }
 0x655   :  { %5672 = vst [vmem:[%s6969_s8] sm:$0xff] %v5666_v38  ;;  %5673 = vst [vmem:[%s6969_s8 + $0x8] sm:$0xff] %v5667_v46 }
 0x656   :  { %5674 = vst [vmem:[%s6969_s8 + $0x10] sm:$0xff] %v5668_v47 }

</bundles_post_ra>
